<compile_context>
chip_gen: v5e
topology: v5e:2x2
jax: 0.10.0
libtpu: 0.0.40
codegen_flags: <defaults>
</compile_context>

<pallas_src>
import functools

import jax
import jax.numpy as jnp
from jax import lax
from jax.experimental import pallas as pl
from jax.experimental.pallas import tpu as pltpu

_NEG_FILL = float(jnp.finfo(jnp.float32).min)   # torch masked_fill value (finfo.min)
_TINY = float(jnp.finfo(jnp.float32).tiny)      # torch small_val (finfo.tiny)


def _supcon_kernel(fi_ref, fj_ref, lab_ref, out_ref,
                   m_sc, l_sc, p_sc, c_sc, *, inv_temp):
    j = pl.program_id(1)

    @pl.when(j == 0)
    def _():
        m_sc[...] = jnp.full_like(m_sc, _NEG_FILL)
        l_sc[...] = jnp.zeros_like(l_sc)
        p_sc[...] = jnp.zeros_like(p_sc)
        c_sc[...] = jnp.zeros_like(c_sc)

    # (TM, TN) logits tile: contraction over D in "NT" form (no transpose), MXU.
    s = lax.dot_general(
        fi_ref[...], fj_ref[...],
        dimension_numbers=(((1,), (1,)), ((), ())),
        preferred_element_type=jnp.float32) * inv_temp

    lab = lab_ref[...].astype(jnp.float32)          # values in {1, 0, -1(pad)}
    posf = (lab == 1.0).astype(jnp.float32)
    keep = jnp.logical_or(lab == 1.0, lab == 0.0)

    # Online (flash-style) row max + rescaled exp-sum over kept entries.
    s_keep = jnp.where(keep, s, _NEG_FILL)
    m_new = jnp.maximum(m_sc[...], jnp.max(s_keep, axis=1, keepdims=True))
    alpha = jnp.exp(m_sc[...] - m_new)
    l_sc[...] = alpha * l_sc[...] + jnp.sum(jnp.exp(s_keep - m_new),
                                            axis=1, keepdims=True)
    p_sc[...] += jnp.sum(posf * s, axis=1, keepdims=True)   # sum_j pos * logits
    c_sc[...] += jnp.sum(posf, axis=1, keepdims=True)       # positive count
    m_sc[...] = m_new

    @pl.when(j == pl.num_programs(1) - 1)
    def _():
        # logsumexp over kept entries; max-shift cancels exactly as in torch.
        lse = m_sc[...] + jnp.log(l_sc[...])
        mlpp = (p_sc[...] - c_sc[...] * lse) / (c_sc[...] + _TINY)
        out_ref[...] = -mlpp


def sup_contrastive_loss(features, labels, temperature, *,
                         block_m=512, block_n=512):
    """features: (N, D) float, labels: (N, N) of {0,1}. Returns scalar f32 loss."""
    # TODO(synk): perm_indexes (torch.index_select row-subset) path not
    # implemented; forward assumes perm_indexes=None.
    features = features.astype(jnp.float32)
    N, D = features.shape
    assert labels.shape == (N, N)

    # F.normalize(features, p=2, dim=1) -- cheap (N, D) preprocessing in XLA.
    f = features / jnp.maximum(
        jnp.sqrt(jnp.sum(features * features, axis=1, keepdims=True)), 1e-12)

    # int8 labels: 1 = positive pair, 0 = negative pair, -1 = padding/ignored.
    lab = jnp.where(labels == 1, 1, jnp.where(labels == 0, 0, -1)).astype(jnp.int8)

    # Tile sizes (multiples of 128) and padded problem size.
    n128 = ((N + 127) // 128) * 128
    tm = min(block_m, n128)
    tn = min(block_n, n128)
    n_pad = ((N + tm - 1) // tm) * tm
    n_pad = ((n_pad + tn - 1) // tn) * tn

    f_p = jnp.pad(f, ((0, n_pad - N), (0, 0)))
    lab_p = jnp.pad(lab, ((0, n_pad - N), (0, n_pad - N)), constant_values=-1)

    grid = (n_pad // tm, n_pad // tn)
    kernel = functools.partial(_supcon_kernel, inv_temp=1.0 / float(temperature))

    neg_mlpp = pl.pallas_call(
        kernel,
        out_shape=jax.ShapeDtypeStruct((n_pad, 1), jnp.float32),
        grid=grid,
        in_specs=[
            pl.BlockSpec((tm, D), lambda i, j: (i, 0)),    # row-tile features
            pl.BlockSpec((tn, D), lambda i, j: (j, 0)),    # col-tile features
            pl.BlockSpec((tm, tn), lambda i, j: (i, j)),   # int8 label tile
        ],
        out_specs=pl.BlockSpec((tm, 1), lambda i, j: (i, 0)),
        scratch_shapes=[
            pltpu.VMEM((tm, 1), jnp.float32),   # running row max
            pltpu.VMEM((tm, 1), jnp.float32),   # running exp-sum (kept cols)
            pltpu.VMEM((tm, 1), jnp.float32),   # sum(pos * logits)
            pltpu.VMEM((tm, 1), jnp.float32),   # positive count
        ],
        compiler_params=pltpu.CompilerParams(
            dimension_semantics=("parallel", "arbitrary")),
    )(f_p, f_p, lab_p)

    # Mean of -mean_log_prob_pos over the N valid rows (padded rows discarded).
    return jnp.mean(neg_mlpp[:N, 0])


def _reference(features, labels, temperature):
    # Pure-JAX mirror of the PyTorch forward (perm_indexes=None).
    f = features / jnp.maximum(
        jnp.sqrt(jnp.sum(features * features, axis=1, keepdims=True)), 1e-12)
    mat = (f @ f.T) / temperature
    pos = (labels == 1).astype(jnp.float32)
    neg = (labels == 0).astype(jnp.float32)
    keep = (pos + neg) > 0
    mat = mat - jnp.max(mat, axis=1, keepdims=True)
    xm = jnp.where(keep, mat, _NEG_FILL)
    den = jnp.log(jnp.sum(jnp.exp(xm), axis=1, keepdims=True))
    den = jnp.where(jnp.any(keep, axis=1, keepdims=True), den, 0.0)
    log_prob = mat - den
    mlpp = jnp.sum(pos * log_prob, axis=1) / (jnp.sum(pos, axis=1) + _TINY)
    return jnp.mean(-mlpp)


if __name__ == "__main__":
    N, D = 8, 32
    temperature = 0.1

    key = jax.random.PRNGKey(0)
    kf, kc = jax.random.split(key)
    features = jax.random.normal(kf, (N, D), dtype=jnp.float32)
    classes = jax.random.randint(kc, (N,), 0, 3)
    labels = (classes[:, None] == classes[None, :]).astype(jnp.float32)

    loss = sup_contrastive_loss(features, labels, temperature)
    loss = jax.block_until_ready(loss)

    ref = _reference(features, labels, temperature)
    assert jnp.allclose(loss, ref, atol=1e-4, rtol=1e-4), (loss, ref)

    print("KERNEL_OK")
</pallas_src>

<mosaic_0001>
module attributes {stable_mosaic.version = 11 : i64} {
  func.func @_supcon_kernel(%arg0: i32, %arg1: i32, %arg2: memref<128x32xf32, #tpu.memory_space<vmem>>, %arg3: memref<128x32xf32, #tpu.memory_space<vmem>>, %arg4: memref<128x128xi8, #tpu.memory_space<vmem>>, %arg5: memref<128x1xf32, #tpu.memory_space<vmem>>, %arg6: memref<128x1xf32, #tpu.memory_space<vmem>>, %arg7: memref<128x1xf32, #tpu.memory_space<vmem>>, %arg8: memref<128x1xf32, #tpu.memory_space<vmem>>, %arg9: memref<128x1xf32, #tpu.memory_space<vmem>>) attributes {dimension_semantics = [#tpu.dimension_semantics<parallel>, #tpu.dimension_semantics<arbitrary>], iteration_bounds = array<i64: 1, 1>, scalar_prefetch = 0 : i64, scratch_operands = 4 : i64, tpu.core_type = #tpu.core_type<tc>, window_params = [{transform_indices = @transform_0, window_bounds = array<i64: 128, 32>}, {transform_indices = @transform_1, window_bounds = array<i64: 128, 32>}, {transform_indices = @transform_2, window_bounds = array<i64: 128, 128>}, {transform_indices = @transform_3, window_bounds = array<i64: 128, 1>}]} {
    %c0_i32 = arith.constant 0 : i32
    %0 = arith.cmpi eq, %arg1, %c0_i32 : i32
    %1 = arith.extui %0 : i1 to i32
    %c0_i32_0 = arith.constant 0 : i32
    %2 = arith.cmpi ne, %1, %c0_i32_0 : i32
    scf.if %2 {
      %cst_35 = arith.constant -3.40282347E+38 : f32
      %52 = vector.broadcast %cst_35 : f32 to vector<128x1xf32>
      %c0_36 = arith.constant 0 : index
      %c0_37 = arith.constant 0 : index
      %53 = vector.load %arg6[%c0_36, %c0_37] : memref<128x1xf32, #tpu.memory_space<vmem>>, vector<128x1xf32>
      tpu.vector_store %arg6[%c0_36, %c0_37], %52 {strides = array<i32>} : memref<128x1xf32, #tpu.memory_space<vmem>>, vector<128x1xf32>,
      %cst_38 = arith.constant 0.000000e+00 : f32
      %54 = vector.broadcast %cst_38 : f32 to vector<128x1xf32>
      %c0_39 = arith.constant 0 : index
      %c0_40 = arith.constant 0 : index
      %55 = vector.load %arg7[%c0_39, %c0_40] : memref<128x1xf32, #tpu.memory_space<vmem>>, vector<128x1xf32>
      tpu.vector_store %arg7[%c0_39, %c0_40], %54 {strides = array<i32>} : memref<128x1xf32, #tpu.memory_space<vmem>>, vector<128x1xf32>,
      %cst_41 = arith.constant 0.000000e+00 : f32
      %56 = vector.broadcast %cst_41 : f32 to vector<128x1xf32>
      %c0_42 = arith.constant 0 : index
      %c0_43 = arith.constant 0 : index
      %57 = vector.load %arg8[%c0_42, %c0_43] : memref<128x1xf32, #tpu.memory_space<vmem>>, vector<128x1xf32>
      tpu.vector_store %arg8[%c0_42, %c0_43], %56 {strides = array<i32>} : memref<128x1xf32, #tpu.memory_space<vmem>>, vector<128x1xf32>,
      %cst_44 = arith.constant 0.000000e+00 : f32
      %58 = vector.broadcast %cst_44 : f32 to vector<128x1xf32>
      %c0_45 = arith.constant 0 : index
      %c0_46 = arith.constant 0 : index
      %59 = vector.load %arg9[%c0_45, %c0_46] : memref<128x1xf32, #tpu.memory_space<vmem>>, vector<128x1xf32>
      tpu.vector_store %arg9[%c0_45, %c0_46], %58 {strides = array<i32>} : memref<128x1xf32, #tpu.memory_space<vmem>>, vector<128x1xf32>,
    } else {
    }
    %c0 = arith.constant 0 : index
    %c0_1 = arith.constant 0 : index
    %3 = vector.load %arg2[%c0, %c0_1] : memref<128x32xf32, #tpu.memory_space<vmem>>, vector<128x32xf32>
    %c0_2 = arith.constant 0 : index
    %c0_3 = arith.constant 0 : index
    %4 = vector.load %arg3[%c0_2, %c0_3] : memref<128x32xf32, #tpu.memory_space<vmem>>, vector<128x32xf32>
    %cst = arith.constant dense<0.000000e+00> : vector<128x128xf32>
    %5 = tpu.matmul %3, %4, %cst {dimension_numbers = #tpu.dot_dimension_numbers<[1], [1], [0], [0], [0, 0, 1, 0], [], []>} : vector<128x32xf32>, vector<128x32xf32>, vector<128x128xf32> -> vector<128x128xf32>
    %cst_4 = arith.constant 1.000000e+01 : f32
    %6 = vector.broadcast %cst_4 : f32 to vector<128x128xf32>
    %7 = arith.mulf %5, %6 : vector<128x128xf32>
    %c0_5 = arith.constant 0 : index
    %c0_6 = arith.constant 0 : index
    %8 = vector.load %arg4[%c0_5, %c0_6] : memref<128x128xi8, #tpu.memory_space<vmem>>, vector<128x128xi8>
    %9 = arith.sitofp %8 : vector<128x128xi8> to vector<128x128xf32>
    %cst_7 = arith.constant 1.000000e+00 : f32
    %10 = vector.broadcast %cst_7 : f32 to vector<128x128xf32>
    %11 = arith.cmpf oeq, %9, %10 : vector<128x128xf32>
    %12 = arith.extui %11 : vector<128x128xi1> to vector<128x128xi32>
    %13 = arith.sitofp %12 : vector<128x128xi32> to vector<128x128xf32>
    %cst_8 = arith.constant 1.000000e+00 : f32
    %14 = vector.broadcast %cst_8 : f32 to vector<128x128xf32>
    %15 = arith.cmpf oeq, %9, %14 : vector<128x128xf32>
    %cst_9 = arith.constant 0.000000e+00 : f32
    %16 = vector.broadcast %cst_9 : f32 to vector<128x128xf32>
    %17 = arith.cmpf oeq, %9, %16 : vector<128x128xf32>
    %18 = arith.ori %15, %17 : vector<128x128xi1>
    %cst_10 = arith.constant -3.40282347E+38 : f32
    %19 = vector.broadcast %cst_10 : f32 to vector<128x128xf32>
    %20 = arith.select %18, %7, %19 : vector<128x128xi1>, vector<128x128xf32>
    %c0_11 = arith.constant 0 : index
    %c0_12 = arith.constant 0 : index
    %21 = vector.load %arg6[%c0_11, %c0_12] : memref<128x1xf32, #tpu.memory_space<vmem>>, vector<128x1xf32>
    %cst_13 = arith.constant dense<0xFF800000> : vector<128xf32>
    %22 = vector.multi_reduction <maximumf>, %20, %cst_13 [1] : vector<128x128xf32> to vector<128xf32>
    %23 = vector.shape_cast %22 : vector<128xf32> to vector<128x1xf32>
    %24 = arith.maximumf %21, %23 : vector<128x1xf32>
    %c0_14 = arith.constant 0 : index
    %c0_15 = arith.constant 0 : index
    %25 = vector.load %arg6[%c0_14, %c0_15] : memref<128x1xf32, #tpu.memory_space<vmem>>, vector<128x1xf32>
    %26 = arith.subf %25, %24 : vector<128x1xf32>
    %27 = math.exp %26 : vector<128x1xf32>
    %c0_16 = arith.constant 0 : index
    %c0_17 = arith.constant 0 : index
    %28 = vector.load %arg7[%c0_16, %c0_17] : memref<128x1xf32, #tpu.memory_space<vmem>>, vector<128x1xf32>
    %29 = arith.mulf %27, %28 : vector<128x1xf32>
    %30 = vector.broadcast %24 : vector<128x1xf32> to vector<128x128xf32>
    %31 = arith.subf %20, %30 : vector<128x128xf32>
    %32 = math.exp %31 : vector<128x128xf32>
    %cst_18 = arith.constant dense<0.000000e+00> : vector<128xf32>
    %33 = vector.multi_reduction <add>, %32, %cst_18 [1] : vector<128x128xf32> to vector<128xf32>
    %34 = vector.shape_cast %33 : vector<128xf32> to vector<128x1xf32>
    %35 = arith.addf %29, %34 : vector<128x1xf32>
    %c0_19 = arith.constant 0 : index
    %c0_20 = arith.constant 0 : index
    %36 = vector.load %arg7[%c0_19, %c0_20] : memref<128x1xf32, #tpu.memory_space<vmem>>, vector<128x1xf32>
    tpu.vector_store %arg7[%c0_19, %c0_20], %35 {strides = array<i32>} : memref<128x1xf32, #tpu.memory_space<vmem>>, vector<128x1xf32>,
    %c0_21 = arith.constant 0 : index
    %c0_22 = arith.constant 0 : index
    %37 = vector.load %arg8[%c0_21, %c0_22] : memref<128x1xf32, #tpu.memory_space<vmem>>, vector<128x1xf32>
    %38 = arith.mulf %13, %7 : vector<128x128xf32>
    %cst_23 = arith.constant dense<0.000000e+00> : vector<128xf32>
    %39 = vector.multi_reduction <add>, %38, %cst_23 [1] : vector<128x128xf32> to vector<128xf32>
    %40 = vector.shape_cast %39 : vector<128xf32> to vector<128x1xf32>
    %41 = arith.addf %37, %40 : vector<128x1xf32>
    %c0_24 = arith.constant 0 : index
    %c0_25 = arith.constant 0 : index
    %42 = vector.load %arg8[%c0_24, %c0_25] : memref<128x1xf32, #tpu.memory_space<vmem>>, vector<128x1xf32>
    tpu.vector_store %arg8[%c0_24, %c0_25], %41 {strides = array<i32>} : memref<128x1xf32, #tpu.memory_space<vmem>>, vector<128x1xf32>,
    %c0_26 = arith.constant 0 : index
    %c0_27 = arith.constant 0 : index
    %43 = vector.load %arg9[%c0_26, %c0_27] : memref<128x1xf32, #tpu.memory_space<vmem>>, vector<128x1xf32>
    %cst_28 = arith.constant dense<0.000000e+00> : vector<128xf32>
    %44 = vector.multi_reduction <add>, %13, %cst_28 [1] : vector<128x128xf32> to vector<128xf32>
    %45 = vector.shape_cast %44 : vector<128xf32> to vector<128x1xf32>
    %46 = arith.addf %43, %45 : vector<128x1xf32>
    %c0_29 = arith.constant 0 : index
    %c0_30 = arith.constant 0 : index
    %47 = vector.load %arg9[%c0_29, %c0_30] : memref<128x1xf32, #tpu.memory_space<vmem>>, vector<128x1xf32>
    tpu.vector_store %arg9[%c0_29, %c0_30], %46 {strides = array<i32>} : memref<128x1xf32, #tpu.memory_space<vmem>>, vector<128x1xf32>,
    %c0_31 = arith.constant 0 : index
    %c0_32 = arith.constant 0 : index
    %48 = vector.load %arg6[%c0_31, %c0_32] : memref<128x1xf32, #tpu.memory_space<vmem>>, vector<128x1xf32>
    tpu.vector_store %arg6[%c0_31, %c0_32], %24 {strides = array<i32>} : memref<128x1xf32, #tpu.memory_space<vmem>>, vector<128x1xf32>,
    %c0_i32_33 = arith.constant 0 : i32
    %49 = arith.cmpi eq, %arg1, %c0_i32_33 : i32
    %50 = arith.extui %49 : i1 to i32
    %c0_i32_34 = arith.constant 0 : i32
    %51 = arith.cmpi ne, %50, %c0_i32_34 : i32
    scf.if %51 {
      %c0_35 = arith.constant 0 : index
      %c0_36 = arith.constant 0 : index
      %52 = vector.load %arg6[%c0_35, %c0_36] : memref<128x1xf32, #tpu.memory_space<vmem>>, vector<128x1xf32>
      %c0_37 = arith.constant 0 : index
      %c0_38 = arith.constant 0 : index
      %53 = vector.load %arg7[%c0_37, %c0_38] : memref<128x1xf32, #tpu.memory_space<vmem>>, vector<128x1xf32>
      %54 = math.log %53 : vector<128x1xf32>
      %55 = arith.addf %52, %54 : vector<128x1xf32>
      %c0_39 = arith.constant 0 : index
      %c0_40 = arith.constant 0 : index
      %56 = vector.load %arg8[%c0_39, %c0_40] : memref<128x1xf32, #tpu.memory_space<vmem>>, vector<128x1xf32>
      %c0_41 = arith.constant 0 : index
      %c0_42 = arith.constant 0 : index
      %57 = vector.load %arg9[%c0_41, %c0_42] : memref<128x1xf32, #tpu.memory_space<vmem>>, vector<128x1xf32>
      %58 = arith.mulf %57, %55 : vector<128x1xf32>
      %59 = arith.subf %56, %58 : vector<128x1xf32>
      %c0_43 = arith.constant 0 : index
      %c0_44 = arith.constant 0 : index
      %60 = vector.load %arg9[%c0_43, %c0_44] : memref<128x1xf32, #tpu.memory_space<vmem>>, vector<128x1xf32>
      %cst_45 = arith.constant 1.17549435E-38 : f32
      %61 = vector.broadcast %cst_45 : f32 to vector<128x1xf32>
      %62 = arith.addf %60, %61 : vector<128x1xf32>
      %63 = arith.divf %59, %62 : vector<128x1xf32>
      %cst_46 = arith.constant 0.000000e+00 : f32
      %64 = vector.broadcast %cst_46 : f32 to vector<128x1xf32>
      %65 = arith.subf %64, %63 : vector<128x1xf32>
      %c0_47 = arith.constant 0 : index
      %c0_48 = arith.constant 0 : index
      %66 = vector.load %arg5[%c0_47, %c0_48] : memref<128x1xf32, #tpu.memory_space<vmem>>, vector<128x1xf32>
      tpu.vector_store %arg5[%c0_47, %c0_48], %65 {strides = array<i32>} : memref<128x1xf32, #tpu.memory_space<vmem>>, vector<128x1xf32>,
    } else {
    }
    return
  }
  func.func @transform_0(%arg0: i32, %arg1: i32) -> (i32, i32) {
    %c0_i32 = arith.constant 0 : i32
    %c0_i32_0 = arith.constant 0 : i32
    return %arg0, %c0_i32 : i32, i32
  }
  func.func @transform_1(%arg0: i32, %arg1: i32) -> (i32, i32) {
    %c0_i32 = arith.constant 0 : i32
    %c0_i32_0 = arith.constant 0 : i32
    return %arg1, %c0_i32 : i32, i32
  }
  func.func @transform_2(%arg0: i32, %arg1: i32) -> (i32, i32) {
    %c0_i32 = arith.constant 0 : i32
    return %arg0, %arg1 : i32, i32
  }
  func.func @transform_3(%arg0: i32, %arg1: i32) -> (i32, i32) {
    %c0_i32 = arith.constant 0 : i32
    %c0_i32_0 = arith.constant 0 : i32
    return %arg0, %c0_i32 : i32, i32
  }
}

</mosaic_0001>

<bundles_post_ra>
// kernel: tpu_custom_call.1
= control target key start
LH: loop header
LB: loop body
LE: loop exit
PB: predicated region body
PF: predicated region fallthrough
CT: control target
= control target key end

     0   :  { %vm115_vm0 = vcmask 261120   ;;  %v1624_v30 = vmov 0.0   ;;  %s3202_s1 = inlined_call_operand.vmem [shape: f32[128,32], index: 1, kind: input, shape index: {}]   ;;  %s3203_s2 = inlined_call_operand.vmem [shape: s8[128,128], index: 2, kind: input, shape index: {}]   ;;  %s3204_s0 = inlined_call_operand.vmem [shape: f32[128,32], index: 0, kind: input, shape index: {}]   ;;  %s3205_s3 = inlined_call_operand.vmem [shape: f32[128,1], index: 3, kind: output, shape index: {}]  }
   0x1   :  { %v114_v0 = vld [vmem:[%s3202_s1 + $0x78] sm:$0xff]  ;;  %v113_v1 = vld [vmem:[%s3202_s1 + $0x70] sm:$0xff]  ;;  %v112_v2 = vld [vmem:[%s3202_s1 + $0x68] sm:$0xff] }
   0x2   :  { %1393 = vmatpush.xpose.msk.msra.mxu0 %vm115_vm0, %v114_v0  ;;  %1441 = vmatpush.xpose.msk.msra.mxu1 %vm115_vm0, %v114_v0  ;;  %v111_v3 = vld [vmem:[%s3202_s1 + $0x60] sm:$0xff]  ;;  %v110_v4 = vld [vmem:[%s3202_s1 + $0x58] sm:$0xff]  ;;  %v109_v5 = vld [vmem:[%s3202_s1 + $0x50] sm:$0xff] }
   0x3   :  { %1442 = vmatpush.xpose.msk.msra.mxu2 %vm115_vm0, %v114_v0  ;;  %1443 = vmatpush.xpose.msk.msra.mxu3 %vm115_vm0, %v114_v0  ;;  %v108_v6 = vld [vmem:[%s3202_s1 + $0x48] sm:$0xff]  ;;  %v107_v7 = vld [vmem:[%s3202_s1 + $0x40] sm:$0xff]  ;;  %v106_v8 = vld [vmem:[%s3202_s1 + $0x38] sm:$0xff] }
   0x4   :  { %v105_v9 = vld [vmem:[%s3202_s1 + $0x30] sm:$0xff]  ;;  %v104_v10 = vld [vmem:[%s3202_s1 + $0x28] sm:$0xff]  ;;  %v103_v11 = vld [vmem:[%s3202_s1 + $0x20] sm:$0xff] }
   0x5   :  { %v102_v12 = vld [vmem:[%s3202_s1 + $0x18] sm:$0xff]  ;;  %v101_v13 = vld [vmem:[%s3202_s1 + $0x10] sm:$0xff]  ;;  %v100_v14 = vld [vmem:[%s3202_s1 + $0x8] sm:$0xff] }
   0x6   :  { %1394 = vmatpush.xpose.msk.msra.mxu0 %vm115_vm0, %v113_v1  ;;  %1444 = vmatpush.xpose.msk.msra.mxu1 %vm115_vm0, %v113_v1  ;;  %v293_v15 = vld [vmem:[%s3203_s2] sm:$0xff]  ;;  %v294_v19 = vld [vmem:[%s3203_s2 + $0x8] sm:$0xff]  ;;  %v295_v36 = vld [vmem:[%s3203_s2 + $0x10] sm:$0xff] }
   0x7   :  { %1445 = vmatpush.xpose.msk.msra.mxu2 %vm115_vm0, %v113_v1  ;;  %1446 = vmatpush.xpose.msk.msra.mxu3 %vm115_vm0, %v113_v1  ;;  %v99_v16 = vld [vmem:[%s3202_s1] sm:$0xff]  ;;  %v297_v17 = vunpack.c.0.s8 %v293_v15  ;;  %v299_v18 = vunpack.c.2.s8 %v293_v15  ;;  %v298_v20 = vunpack.c.1.s8 %v293_v15  ;;  %v300_v21 = vunpack.c.3.s8 %v293_v15  ;;  %v84_v41 = vld [vmem:[%s3204_s0 + $0x8] sm:$0xff]  ;;  %v85_v54 = vld [vmem:[%s3204_s0 + $0x10] sm:$0xff] }
   0x8   :  { %v302_v24 = vunpack.c.1.s8 %v294_v19  ;;  %v83_v26 = vld [vmem:[%s3204_s0] sm:$0xff]  ;;  %v301_v37 = vunpack.c.0.s8 %v294_v19  ;;  %v303_v39 = vunpack.c.2.s8 %v294_v19  ;;  %v305_v40 = vunpack.c.0.s8 %v295_v36  ;;  %v88_v42 = vld [vmem:[%s3204_s0 + $0x28] sm:$0xff]  ;;  %v89_v55 = vld [vmem:[%s3204_s0 + $0x30] sm:$0xff] }
   0x9   :  { %v1761_v22 = vcvt.s32.f32 %v297_v17  ;;  %v1763_v23 = vcvt.s32.f32 %v299_v18  ;;  %v1765_v25 = vcvt.s32.f32 %v298_v20  ;;  %v87_v27 = vld [vmem:[%s3204_s0 + $0x20] sm:$0xff]  ;;  %v1798_v33 = vcvt.s32.f32 %v300_v21  ;;  %v96_v44 = vld [vmem:[%s3204_s0 + $0x68] sm:$0xff]  ;;  %v93_v57 = vld [vmem:[%s3204_s0 + $0x50] sm:$0xff] }
   0xa   :  { %1395 = vmatpush.xpose.msk.msra.mxu0 %vm115_vm0, %v112_v2  ;;  %1447 = vmatpush.xpose.msk.msra.mxu1 %vm115_vm0, %v112_v2  ;;  %v91_v28 = vld [vmem:[%s3204_s0 + $0x40] sm:$0xff]  ;;  %v1800_v34 = vcvt.s32.f32 %v302_v24  ;;  %v1815_v38 = vcvt.s32.f32 %v301_v37  ;;  %v304_v43 = vunpack.c.3.s8 %v294_v19  ;;  %v92_v45 = vld [vmem:[%s3204_s0 + $0x48] sm:$0xff]  ;;  %v1844_v48 = vcvt.s32.f32 %v303_v39  ;;  %v97_v58 = vld [vmem:[%s3204_s0 + $0x70] sm:$0xff] }
   0xb   :  { %1448 = vmatpush.xpose.msk.msra.mxu2 %vm115_vm0, %v112_v2  ;;  %1449 = vmatpush.xpose.msk.msra.mxu3 %vm115_vm0, %v112_v2  ;;  %v95_v29 = vld [vmem:[%s3204_s0 + $0x60] sm:$0xff]  ;;  %vm329_vm1 = vcmp.eq.f32.partialorder %v1761_v22, 1.0  ;;  %vm331_vm2 = vcmp.eq.f32.partialorder %v1763_v23, 1.0  ;;  %vm330_vm3 = vcmp.eq.f32.partialorder %v1765_v25, 1.0  ;;  %vm3208_vm4 = vcmp.eq.f32.partialorder %v1798_v33, 1.0  ;;  %v296_v0 = vld [vmem:[%s3203_s2 + $0x18] sm:$0xff] }
   0xc   :  { %v1789_v31 = vsel %vm329_vm1, 1.0, %v1624_v30  ;;  %v1794_v32 = vsel %vm331_vm2, 1.0, %v1624_v30  ;;  %v1805_v35 = vsel %vm330_vm3, 1.0, %v1624_v30  ;;  %vm334_vm5 = vcmp.eq.f32.partialorder %v1800_v34, 1.0 }
   0xd   :  { %874 = vadd.xlane.f32.xlu0 %v1789_v31  ;;  %878 = vadd.xlane.f32.xlu2 %v1794_v32  ;;  %vm333_vm6 = vcmp.eq.f32.partialorder %v1815_v38, 1.0  ;;  %v1835_v46 = vsel %vm3208_vm4, 1.0, %v1624_v30  ;;  %v1840_v47 = vsel %vm334_vm5, 1.0, %v1624_v30  ;;  %v1846_v49 = vcvt.s32.f32 %v305_v40 }
   0xe   :  { %1396 = vmatpush.xpose.msk.msra.mxu0 %vm115_vm0, %v111_v3  ;;  %1450 = vmatpush.xpose.msk.msra.mxu1 %vm115_vm0, %v111_v3  ;;  %v1851_v50 = vsel %vm333_vm6, 1.0, %v1624_v30  ;;  %v1855_v51 = vcvt.s32.f32 %v304_v43  ;;  %vm335_vm7 = vcmp.eq.f32.partialorder %v1844_v48, 1.0  ;;  %v306_v52 = vunpack.c.1.s8 %v295_v36 }
   0xf   :  { %1451 = vmatpush.xpose.msk.msra.mxu2 %vm115_vm0, %v111_v3  ;;  %1452 = vmatpush.xpose.msk.msra.mxu3 %vm115_vm0, %v111_v3  ;;  %vm337_vm8 = vcmp.eq.f32.partialorder %v1846_v49, 1.0  ;;  %v308_v53 = vunpack.c.3.s8 %v295_v36  ;;  %v307_v56 = vunpack.c.2.s8 %v295_v36  ;;  %v1878_v59 = vsel %vm335_vm7, 1.0, %v1624_v30 }
  0x10   :  { %876 = vadd.xlane.f32.xlu1 %v1805_v35  ;;  %vm3207_vm9 = vcmp.eq.f32.partialorder %v1855_v51, 1.0  ;;  %v1883_v60 = vsel %vm337_vm8, 1.0, %v1624_v30  ;;  %v1887_v61 = vcvt.s32.f32 %v306_v52  ;;  %v309_v2 = vunpack.c.0.s8 %v296_v0 }
  0x11   :  { %v1889_v62 = vcvt.s32.f32 %v308_v53  ;;  %v1894_v63 = vsel %vm3207_vm9, 1.0, %v1624_v30  ;;  %v1901_v1 = vcvt.s32.f32 %v307_v56  ;;  %v311_v3 = vunpack.c.2.s8 %v296_v0 }
  0x12   :  { %1397 = vmatpush.xpose.msk.msra.mxu0 %vm115_vm0, %v110_v4  ;;  %1453 = vmatpush.xpose.msk.msra.mxu1 %vm115_vm0, %v110_v4  ;;  %vm338_vm10 = vcmp.eq.f32.partialorder %v1887_v61, 1.0  ;;  %v312_v15 = vunpack.c.3.s8 %v296_v0  ;;  %vm377_vm9 = vcmp.eq.f32.partialorder %v1761_v22, 0.0 }
  0x13   :  { %1454 = vmatpush.xpose.msk.msra.mxu2 %vm115_vm0, %v110_v4  ;;  %1455 = vmatpush.xpose.msk.msra.mxu3 %vm115_vm0, %v110_v4  ;;  %vm3206_vm11 = vcmp.eq.f32.partialorder %v1889_v62, 1.0  ;;  %v86_v4 = vld [vmem:[%s3204_s0 + $0x18] sm:$0xff]  ;;  %vm339_vm12 = vcmp.eq.f32.partialorder %v1901_v1, 1.0 }
  0x14   :  { %v1955_v18 = vcvt.s32.f32 %v312_v15 }
  0x15   :  { %880 = vadd.xlane.f32.xlu0 %v1835_v46  ;;  %884 = vadd.xlane.f32.xlu2 %v1840_v47 }
  0x16   :  { %1398 = vmatpush.xpose.msk.msra.mxu0 %vm115_vm0, %v109_v5  ;;  %1456 = vmatpush.xpose.msk.msra.mxu1 %vm115_vm0, %v109_v5 }
  0x17   :  { %1457 = vmatpush.xpose.msk.msra.mxu2 %vm115_vm0, %v109_v5  ;;  %1458 = vmatpush.xpose.msk.msra.mxu3 %vm115_vm0, %v109_v5  ;;  %v90_v5 = vld [vmem:[%s3204_s0 + $0x38] sm:$0xff] }
  0x18   :  { %882 = vadd.xlane.f32.xlu1 %v1851_v50 }
  0x1a   :  { %1399 = vmatpush.xpose.msk.msra.mxu0 %vm115_vm0, %v108_v6  ;;  %1459 = vmatpush.xpose.msk.msra.mxu1 %vm115_vm0, %v108_v6 }
  0x1b   :  { %1460 = vmatpush.xpose.msk.msra.mxu2 %vm115_vm0, %v108_v6  ;;  %1461 = vmatpush.xpose.msk.msra.mxu3 %vm115_vm0, %v108_v6  ;;  %v310_v6 = vunpack.c.1.s8 %v296_v0 }
  0x1d   :  { %886 = vadd.xlane.f32.xlu0 %v1878_v59  ;;  %890 = vadd.xlane.f32.xlu2 %v1883_v60 }
  0x1e   :  { %1400 = vmatpush.xpose.msk.msra.mxu0 %vm115_vm0, %v107_v7  ;;  %1462 = vmatpush.xpose.msk.msra.mxu1 %vm115_vm0, %v107_v7 }
  0x1f   :  { %1463 = vmatpush.xpose.msk.msra.mxu2 %vm115_vm0, %v107_v7  ;;  %1464 = vmatpush.xpose.msk.msra.mxu3 %vm115_vm0, %v107_v7  ;;  %v98_v7 = vld [vmem:[%s3204_s0 + $0x78] sm:$0xff] }
  0x20   :  { %888 = vadd.xlane.f32.xlu1 %v1894_v63 }
  0x22   :  { %1401 = vmatpush.xpose.msk.msra.mxu0 %vm115_vm0, %v106_v8  ;;  %1465 = vmatpush.xpose.msk.msra.mxu1 %vm115_vm0, %v106_v8 }
  0x23   :  { %1466 = vmatpush.xpose.msk.msra.mxu2 %vm115_vm0, %v106_v8  ;;  %1467 = vmatpush.xpose.msk.msra.mxu3 %vm115_vm0, %v106_v8  ;;  %v94_v8 = vld [vmem:[%s3204_s0 + $0x58] sm:$0xff] }
  0x26   :  { %1402 = vmatpush.xpose.msk.msra.mxu0 %vm115_vm0, %v105_v9  ;;  %1468 = vmatpush.xpose.msk.msra.mxu1 %vm115_vm0, %v105_v9 }
  0x27   :  { %1469 = vmatpush.xpose.msk.msra.mxu2 %vm115_vm0, %v105_v9  ;;  %1470 = vmatpush.xpose.msk.msra.mxu3 %vm115_vm0, %v105_v9  ;;  %v1924_v9 = vsel %vm338_vm10, 1.0, %v1624_v30 }
  0x28   :  { %892 = vadd.xlane.f32.xlu0 %v1924_v9 }
  0x2a   :  { %1403 = vmatpush.xpose.msk.msra.mxu0 %vm115_vm0, %v104_v10  ;;  %1471 = vmatpush.xpose.msk.msra.mxu1 %vm115_vm0, %v104_v10 }
  0x2b   :  { %1472 = vmatpush.xpose.msk.msra.mxu2 %vm115_vm0, %v104_v10  ;;  %1473 = vmatpush.xpose.msk.msra.mxu3 %vm115_vm0, %v104_v10  ;;  %v1929_v10 = vsel %vm3206_vm11, 1.0, %v1624_v30  ;;  %vm381_vm11 = vcmp.eq.f32.partialorder %v1815_v38, 0.0 }
  0x2c   :  { %896 = vadd.xlane.f32.xlu2 %v1929_v10  ;;  %vm397_vm4 = vmor %vm333_vm6, %vm381_vm11 }
  0x2e   :  { %1404 = vmatpush.xpose.msk.msra.mxu0 %vm115_vm0, %v103_v11  ;;  %1474 = vmatpush.xpose.msk.msra.mxu1 %vm115_vm0, %v103_v11 }
  0x2f   :  { %1475 = vmatpush.xpose.msk.msra.mxu2 %vm115_vm0, %v103_v11  ;;  %1476 = vmatpush.xpose.msk.msra.mxu3 %vm115_vm0, %v103_v11  ;;  %v325_v11 = vcvt.s32.f32 %v309_v2 }
  0x31   :  { %vm341_vm13 = vcmp.eq.f32.partialorder %v325_v11, 1.0 }
  0x32   :  { %1405 = vmatpush.xpose.msk.msra.mxu0 %vm115_vm0, %v102_v12  ;;  %1477 = vmatpush.xpose.msk.msra.mxu1 %vm115_vm0, %v102_v12 }
  0x33   :  { %1478 = vmatpush.xpose.msk.msra.mxu2 %vm115_vm0, %v102_v12  ;;  %1479 = vmatpush.xpose.msk.msra.mxu3 %vm115_vm0, %v102_v12  ;;  %v1933_v12 = vcvt.s32.f32 %v311_v3 }
  0x35   :  { %vm3209_vm14 = vcmp.eq.f32.partialorder %v1933_v12, 1.0 }
  0x36   :  { %1406 = vmatpush.xpose.msk.msra.mxu0 %vm115_vm0, %v101_v13  ;;  %1480 = vmatpush.xpose.msk.msra.mxu1 %vm115_vm0, %v101_v13  ;;  %v1953_v17 = vsel %vm3209_vm14, 1.0, %v1624_v30  ;;  %vm393_vm14 = vmor %vm329_vm1, %vm377_vm9  ;;  %vm385_vm1 = vcmp.eq.f32.partialorder %v1846_v49, 0.0 }
  0x37   :  { %1481 = vmatpush.xpose.msk.msra.mxu2 %vm115_vm0, %v101_v13  ;;  %1482 = vmatpush.xpose.msk.msra.mxu3 %vm115_vm0, %v101_v13  ;;  %v1938_v13 = vsel %vm339_vm12, 1.0, %v1624_v30  ;;  %vm401_vm11 = vmor %vm337_vm8, %vm385_vm1  ;;  %vm18_vm8 = vcmask 7168   ;;  %vm387_vm1 = vcmp.eq.f32.partialorder %v1901_v1, 0.0 }
  0x38   :  { %894 = vadd.xlane.f32.xlu1 %v1938_v13  ;;  %902 = vadd.xlane.f32.xlu2 %v1953_v17  ;;  %67 = vst.msk [vmem:[#allocation5] sm:$0xff] %vm18_vm8, %v1624_v30 }
  0x39   :  { %35 = vst.msk [vmem:[#allocation3] sm:$0xff] %vm18_vm8, %v1624_v30 }
  0x3a   :  { %1407 = vmatpush.xpose.msk.msra.mxu0 %vm115_vm0, %v100_v14  ;;  %1483 = vmatpush.xpose.msk.msra.mxu1 %vm115_vm0, %v100_v14  ;;  %36 = vst.msk [vmem:[#allocation3 + $0x8] sm:$0xff] %vm18_vm8, %v1624_v30 }
  0x3b   :  { %1484 = vmatpush.xpose.msk.msra.mxu2 %vm115_vm0, %v100_v14  ;;  %1485 = vmatpush.xpose.msk.msra.mxu3 %vm115_vm0, %v100_v14  ;;  %v326_v14 = vcvt.s32.f32 %v310_v6  ;;  %37 = vst.msk [vmem:[#allocation3 + $0x10] sm:$0xff] %vm18_vm8, %v1624_v30 }
  0x3c   :  { %38 = vst.msk [vmem:[#allocation3 + $0x18] sm:$0xff] %vm18_vm8, %v1624_v30 }
  0x3d   :  { %vm342_vm15 = vcmp.eq.f32.partialorder %v326_v14, 1.0  ;;  %vm390_vm9 = vcmp.eq.f32.partialorder %v326_v14, 0.0  ;;  %39 = vst.msk [vmem:[#allocation3 + $0x20] sm:$0xff] %vm18_vm8, %v1624_v30 }
  0x3e   :  { %1408 = vmatpush.xpose.msk.msra.mxu0 %vm115_vm0, %v99_v16  ;;  %1486 = vmatpush.xpose.msk.msra.mxu1 %vm115_vm0, %v99_v16  ;;  %v1959_v19 = vsel %vm342_vm15, 1.0, %v1624_v30  ;;  %40 = vst.msk [vmem:[#allocation3 + $0x28] sm:$0xff] %vm18_vm8, %v1624_v30 }
  0x3f   :  { %1487 = vmatpush.xpose.msk.msra.mxu2 %vm115_vm0, %v99_v16  ;;  %1488 = vmatpush.xpose.msk.msra.mxu3 %vm115_vm0, %v99_v16  ;;  %v1948_v16 = vsel %vm341_vm13, 1.0, %v1624_v30  ;;  %41 = vst.msk [vmem:[#allocation3 + $0x30] sm:$0xff] %vm18_vm8, %v1624_v30 }
  0x40   :  { %898 = vadd.xlane.f32.xlu0 %v1948_v16  ;;  %900 = vadd.xlane.f32.xlu1 %v1959_v19  ;;  %42 = vst.msk [vmem:[#allocation3 + $0x38] sm:$0xff] %vm18_vm8, %v1624_v30 }
  0x41   :  { %1409 = vmatmul.msk.f32.vlgmr.msra.gmra.mxu0 %vm115_vm0, %v83_v26  ;;  %1413 = vmatmul.msk.f32.vlgmr.msra.gmra.mxu1 %vm115_vm0, %v87_v27  ;;  %43 = vst.msk [vmem:[#allocation3 + $0x40] sm:$0xff] %vm18_vm8, %v1624_v30 }
  0x42   :  { %1417 = vmatmul.msk.f32.vlgmr.msra.gmra.mxu2 %vm115_vm0, %v91_v28  ;;  %1421 = vmatmul.msk.f32.vlgmr.msra.gmra.mxu3 %vm115_vm0, %v95_v29  ;;  %44 = vst.msk [vmem:[#allocation3 + $0x48] sm:$0xff] %vm18_vm8, %v1624_v30 }
  0x43   :  { %45 = vst.msk [vmem:[#allocation3 + $0x50] sm:$0xff] %vm18_vm8, %v1624_v30 }
  0x44   :  { %46 = vst.msk [vmem:[#allocation3 + $0x58] sm:$0xff] %vm18_vm8, %v1624_v30 }
  0x45   :  { %47 = vst.msk [vmem:[#allocation3 + $0x60] sm:$0xff] %vm18_vm8, %v1624_v30 }
  0x46   :  { %48 = vst.msk [vmem:[#allocation3 + $0x68] sm:$0xff] %vm18_vm8, %v1624_v30 }
  0x47   :  { %49 = vst.msk [vmem:[#allocation3 + $0x70] sm:$0xff] %vm18_vm8, %v1624_v30 }
  0x48   :  { %50 = vst.msk [vmem:[#allocation3 + $0x78] sm:$0xff] %vm18_vm8, %v1624_v30 }
  0x49   :  { %1410 = vmatmul.msk.f32.gmra.mxu0 %vm115_vm0, %v84_v41  ;;  %1414 = vmatmul.msk.f32.gmra.mxu1 %vm115_vm0, %v88_v42  ;;  %51 = vst.msk [vmem:[#allocation4] sm:$0xff] %vm18_vm8, %v1624_v30 }
  0x4a   :  { %1422 = vmatmul.msk.f32.gmra.mxu3 %vm115_vm0, %v96_v44  ;;  %1418 = vmatmul.msk.f32.gmra.mxu2 %vm115_vm0, %v92_v45  ;;  %52 = vst.msk [vmem:[#allocation4 + $0x8] sm:$0xff] %vm18_vm8, %v1624_v30 }
  0x4b   :  { %53 = vst.msk [vmem:[#allocation4 + $0x10] sm:$0xff] %vm18_vm8, %v1624_v30 }
  0x4c   :  { %54 = vst.msk [vmem:[#allocation4 + $0x18] sm:$0xff] %vm18_vm8, %v1624_v30 }
  0x4d   :  { %55 = vst.msk [vmem:[#allocation4 + $0x20] sm:$0xff] %vm18_vm8, %v1624_v30 }
  0x4e   :  { %56 = vst.msk [vmem:[#allocation4 + $0x28] sm:$0xff] %vm18_vm8, %v1624_v30 }
  0x4f   :  { %57 = vst.msk [vmem:[#allocation4 + $0x30] sm:$0xff] %vm18_vm8, %v1624_v30 }
  0x50   :  { %58 = vst.msk [vmem:[#allocation4 + $0x38] sm:$0xff] %vm18_vm8, %v1624_v30 }
  0x51   :  { %1411 = vmatmul.msk.f32.gmra.mxu0 %vm115_vm0, %v85_v54  ;;  %1415 = vmatmul.msk.f32.gmra.mxu1 %vm115_vm0, %v89_v55  ;;  %59 = vst.msk [vmem:[#allocation4 + $0x40] sm:$0xff] %vm18_vm8, %v1624_v30 }
  0x52   :  { %1419 = vmatmul.msk.f32.gmra.mxu2 %vm115_vm0, %v93_v57  ;;  %1423 = vmatmul.msk.f32.gmra.mxu3 %vm115_vm0, %v97_v58  ;;  %60 = vst.msk [vmem:[#allocation4 + $0x48] sm:$0xff] %vm18_vm8, %v1624_v30 }
  0x53   :  { %61 = vst.msk [vmem:[#allocation4 + $0x50] sm:$0xff] %vm18_vm8, %v1624_v30 }
  0x54   :  { %62 = vst.msk [vmem:[#allocation4 + $0x58] sm:$0xff] %vm18_vm8, %v1624_v30 }
  0x55   :  { %63 = vst.msk [vmem:[#allocation4 + $0x60] sm:$0xff] %vm18_vm8, %v1624_v30 }
  0x56   :  { %64 = vst.msk [vmem:[#allocation4 + $0x68] sm:$0xff] %vm18_vm8, %v1624_v30 }
  0x57   :  { %65 = vst.msk [vmem:[#allocation4 + $0x70] sm:$0xff] %vm18_vm8, %v1624_v30 }
  0x58   :  { %66 = vst.msk [vmem:[#allocation4 + $0x78] sm:$0xff] %vm18_vm8, %v1624_v30 }
  0x59   :  { %1412 = vmatmul.msk.f32.gmra.mxu0 %vm115_vm0, %v86_v4  ;;  %1416 = vmatmul.msk.f32.gmra.mxu1 %vm115_vm0, %v90_v5  ;;  %68 = vst.msk [vmem:[#allocation5 + $0x8] sm:$0xff] %vm18_vm8, %v1624_v30 }
  0x5a   :  { %1424 = vmatmul.msk.f32.gmra.mxu3 %vm115_vm0, %v98_v7  ;;  %1420 = vmatmul.msk.f32.gmra.mxu2 %vm115_vm0, %v94_v8  ;;  %vm3210_vm0 = vcmp.eq.f32.partialorder %v1955_v18, 1.0  ;;  %69 = vst.msk [vmem:[#allocation5 + $0x10] sm:$0xff] %vm18_vm8, %v1624_v30 }
  0x5b   :  { %v1968_v20 = vsel %vm3210_vm0, 1.0, %v1624_v30  ;;  %vm389_vm0 = vcmp.eq.f32.partialorder %v325_v11, 0.0  ;;  %70 = vst.msk [vmem:[#allocation5 + $0x18] sm:$0xff] %vm18_vm8, %v1624_v30 }
  0x5c   :  { %904 = vadd.xlane.f32.xlu0 %v1968_v20  ;;  %vm405_vm6 = vmor %vm341_vm13, %vm389_vm0  ;;  %vm382_vm0 = vcmp.eq.f32.partialorder %v1800_v34, 0.0  ;;  %71 = vst.msk [vmem:[#allocation5 + $0x20] sm:$0xff] %vm18_vm8, %v1624_v30 }
  0x5d   :  { %72 = vst.msk [vmem:[#allocation5 + $0x28] sm:$0xff] %vm18_vm8, %v1624_v30 }
  0x5e   :  { %73 = vst.msk [vmem:[#allocation5 + $0x30] sm:$0xff] %vm18_vm8, %v1624_v30 }
  0x5f   :  { %74 = vst.msk [vmem:[#allocation5 + $0x38] sm:$0xff] %vm18_vm8, %v1624_v30 }
  0x60   :  { %75 = vst.msk [vmem:[#allocation5 + $0x40] sm:$0xff] %vm18_vm8, %v1624_v30 }
  0x61   :  { %76 = vst.msk [vmem:[#allocation5 + $0x48] sm:$0xff] %vm18_vm8, %v1624_v30 }
  0x62   :  { %77 = vst.msk [vmem:[#allocation5 + $0x50] sm:$0xff] %vm18_vm8, %v1624_v30 }
  0x63   :  { %78 = vst.msk [vmem:[#allocation5 + $0x58] sm:$0xff] %vm18_vm8, %v1624_v30 }
  0x64   :  { %79 = vst.msk [vmem:[#allocation5 + $0x60] sm:$0xff] %vm18_vm8, %v1624_v30 }
  0x65   :  { %80 = vst.msk [vmem:[#allocation5 + $0x68] sm:$0xff] %vm18_vm8, %v1624_v30 }
  0x66   :  { %81 = vst.msk [vmem:[#allocation5 + $0x70] sm:$0xff] %vm18_vm8, %v1624_v30 }
  0x67   :  { %82 = vst.msk [vmem:[#allocation5 + $0x78] sm:$0xff] %vm18_vm8, %v1624_v30 }
  0x6b   :  { %v870_v30 = vld [vmem:[#allocation5 + $0x60] sm:$0xff] }
  0xbe   :  { %v229_v21 = vpop.f32.mrf.mxu0  ;;  %v241_v24 = vpop.f32.mrf.mxu1 }
  0xbf   :  { %v277_v26 = vmul.f32 10.0, %v229_v21  ;;  %v281_v27 = vmul.f32 10.0, %v241_v24 }
  0xc1   :  { %v1977_v28 = vsel %vm397_vm4, %v281_v27, -3.4028235e+38  ;;  %v1979_v29 = vsel %vm393_vm14, %v277_v26, -3.4028235e+38  ;;  %v778_v36 = vmul.f32 %v1789_v31, %v277_v26  ;;  %v782_v41 = vmul.f32 %v1851_v50, %v281_v27  ;;  %vm406_vm14 = vmor %vm342_vm15, %vm390_vm9 }
  0xc2   :  { %449 = vmax.xlane.f32.xlu2 %v1977_v28  ;;  %441 = vmax.xlane.f32.xlu0 %v1979_v29  ;;  %vm378_vm4 = vcmp.eq.f32.partialorder %v1765_v25, 0.0  ;;  %vm398_vm15 = vmor %vm334_vm5, %vm382_vm0 }
  0xc3   :  { %794 = vadd.xlane.f32.xlu1 %v778_v36  ;;  %vm394_vm13 = vmor %vm330_vm3, %vm378_vm4  ;;  %vm379_vm3 = vcmp.eq.f32.partialorder %v1763_v23, 0.0 }
  0xc4   :  { %vm403_vm9 = vmor %vm339_vm12, %vm387_vm1  ;;  %vm380_vm12 = vcmp.eq.f32.partialorder %v1798_v33, 0.0  ;;  %vm388_vm1 = vcmp.eq.f32.partialorder %v1889_v62, 0.0 }
  0xc5   :  { %v253_v37 = vpop.f32.mrf.mxu2  ;;  %v265_v38 = vpop.f32.mrf.mxu3 }
  0xc6   :  { %v285_v22 = vmul.f32 10.0, %v253_v37  ;;  %v1985_v39 = vmul.f32 10.0, %v265_v38  ;;  %v232_v40 = vpop.f32.mrf.mxu0  ;;  %v244_v50 = vpop.f32.mrf.mxu1 }
  0xc7   :  { %v278_v43 = vmul.f32 10.0, %v232_v40  ;;  %v282_v25 = vmul.f32 10.0, %v244_v50 }
  0xc8   :  { %v1989_v42 = vsel %vm405_vm6, %v1985_v39, -3.4028235e+38  ;;  %v786_v31 = vmul.f32 %v1883_v60, %v285_v22  ;;  %v2002_v52 = vsel %vm401_vm11, %v285_v22, -3.4028235e+38  ;;  %vm395_vm6 = vmor %vm331_vm2, %vm379_vm3  ;;  %v875_v60 = vpop.xlane.xlu0 %874  ;;  %vm386_vm2 = vcmp.eq.f32.partialorder %v1887_v61, 0.0  ;;  %v2062_v61 = vpop.xlane.xlu2 %878 }
  0xc9   :  { %v2004_v53 = vsel %vm394_vm13, %v278_v43, -3.4028235e+38  ;;  %v783_v56 = vmul.f32 %v1840_v47, %v282_v25  ;;  %v2029_v57 = vsel %vm398_vm15, %v282_v25, -3.4028235e+38  ;;  %v858_v47 = vld [vmem:[#allocation5] sm:$0xff]  ;;  %vm402_vm5 = vmor %vm338_vm10, %vm386_vm2  ;;  %v779_v6 = vmul.f32 %v1805_v35, %v278_v43  ;;  %v860_v43 = vld [vmem:[#allocation5 + $0x10] sm:$0xff] }
  0xca   :  { %802 = vadd.xlane.f32.xlu2 %v782_v41  ;;  %465 = vmax.xlane.f32.xlu0 %v1989_v42  ;;  %v906_v3 = vadd.f32 %v875_v60, %v858_v47  ;;  %vm383_vm10 = vcmp.eq.f32.partialorder %v1844_v48, 0.0  ;;  %vm3229_vm11 = vcmp.eq.f32.partialorder %v1933_v12, 1.0  ;;  %vm392_vm3 = vcmp.eq.f32.partialorder %v1955_v18, 0.0  ;;  %v877_v41 = vpop.xlane.xlu1 %876  ;;  %v859_v47 = vld [vmem:[#allocation5 + $0x8] sm:$0xff] }
  0xcb   :  { %810 = vadd.xlane.f32.xlu1 %v786_v31  ;;  %vm399_vm4 = vmor %vm335_vm7, %vm383_vm10  ;;  %vm391_vm7 = vcmp.eq.f32.partialorder %v1933_v12, 0.0  ;;  %vm3231_vm15 = vcmp.eq.f32.partialorder %v1955_v18, 1.0  ;;  %vm384_vm2 = vcmp.eq.f32.partialorder %v1855_v51, 0.0 }
  0xcc   :  { %922 = vst.msk [vmem:[#allocation5] sm:$0xff] %vm18_vm8, %v906_v3  ;;  %vm407_vm13 = vmor %vm3229_vm11, %vm391_vm7  ;;  %v907_v3 = vadd.f32 %v877_v41, %v859_v47  ;;  %v868_v41 = vld [vmem:[#allocation5 + $0x50] sm:$0xff] }
  0xcd   :  { %v268_v44 = vpop.f32.mrf.mxu3  ;;  %v256_v58 = vpop.f32.mrf.mxu2 }
  0xce   :  { %v2000_v45 = vmul.f32 10.0, %v268_v44  ;;  %v235_v55 = vpop.f32.mrf.mxu0  ;;  %v247_v23 = vpop.f32.mrf.mxu1  ;;  %v286_v2 = vmul.f32 10.0, %v256_v58  ;;  %v861_v44 = vld [vmem:[#allocation5 + $0x18] sm:$0xff]  ;;  %923 = vst.msk [vmem:[#allocation5 + $0x8] sm:$0xff] %vm18_vm8, %v907_v3 }
  0xcf   :  { %v2016_v49 = vmul.f32 10.0, %v235_v55  ;;  %v283_v0 = vmul.f32 10.0, %v247_v23  ;;  %v864_v23 = vld [vmem:[#allocation5 + $0x30] sm:$0xff] }
  0xd0   :  { %v2007_v54 = vsel %vm406_vm14, %v2000_v45, -3.4028235e+38  ;;  %v2054_v4 = vsel %vm402_vm5, %v286_v2, -3.4028235e+38  ;;  %v2067_v8 = vpop.xlane.xlu0 %880  ;;  %v787_v48 = vmul.f32 %v1924_v9, %v286_v2  ;;  %v2104_v9 = vpop.xlane.xlu2 %884  ;;  %vm3230_vm14 = vcmp.eq.f32.partialorder %v1798_v33, 1.0  ;;  %v866_v2 = vld [vmem:[#allocation5 + $0x40] sm:$0xff] }
  0xd1   :  { %v2034_v34 = vsel %vm395_vm6, %v2016_v49, -3.4028235e+38  ;;  %v784_v5 = vmul.f32 %v1878_v59, %v283_v0  ;;  %v2087_v11 = vsel %vm399_vm4, %v283_v0, -3.4028235e+38  ;;  %vm396_vm0 = vmor %vm3230_vm14, %vm380_vm12  ;;  %v780_v26 = vmul.f32 %v1794_v32, %v2016_v49 }
  0xd2   :  { %457 = vmax.xlane.f32.xlu2 %v2002_v52  ;;  %443 = vmax.xlane.f32.xlu0 %v2004_v53  ;;  %vm408_vm6 = vmor %vm3231_vm15, %vm392_vm3  ;;  %vm3232_vm5 = vcmp.eq.f32.partialorder %v1855_v51, 1.0  ;;  %vm3233_vm4 = vcmp.eq.f32.partialorder %v1889_v62, 1.0  ;;  %v908_v62 = vadd.f32 %v2062_v61, %v860_v43  ;;  %v883_v58 = vpop.xlane.xlu1 %882  ;;  %v909_v60 = vadd.f32 %v2067_v8, %v861_v44  ;;  %v869_v8 = vld [vmem:[#allocation5 + $0x58] sm:$0xff] }
  0xd3   :  { %467 = vmax.xlane.f32.xlu1 %v2007_v54  ;;  %vm400_vm10 = vmor %vm3232_vm5, %vm384_vm2 }
  0xd4   :  { %924 = vst.msk [vmem:[#allocation5 + $0x10] sm:$0xff] %vm18_vm8, %v908_v62 }
  0xd5   :  { %v259_v7 = vpop.f32.mrf.mxu2  ;;  %v271_v59 = vpop.f32.mrf.mxu3  ;;  %925 = vst.msk [vmem:[#allocation5 + $0x18] sm:$0xff] %vm18_vm8, %v909_v60 }
  0xd6   :  { %v2075_v35 = vmul.f32 10.0, %v259_v7  ;;  %v238_v1 = vpop.f32.mrf.mxu0  ;;  %v2107_v15 = vmul.f32 10.0, %v271_v59  ;;  %v250_v12 = vpop.f32.mrf.mxu1 }
  0xd7   :  { %v280_v24 = vmul.f32 10.0, %v238_v1  ;;  %v284_v32 = vmul.f32 10.0, %v250_v12 }
  0xd8   :  { %v2093_v14 = vsel %vm403_vm9, %v2075_v35, -3.4028235e+38  ;;  %v2111_v21 = vpop.xlane.xlu0 %886  ;;  %v2126_v27 = vsel %vm407_vm13, %v2107_v15, -3.4028235e+38  ;;  %v891_v38 = vpop.xlane.xlu2 %890  ;;  %vm404_vm9 = vmor %vm3233_vm4, %vm388_vm1 }
  0xd9   :  { %v2130_v36 = vsel %vm396_vm0, %v280_v24, -3.4028235e+38  ;;  %v785_v40 = vmul.f32 %v1894_v63, %v284_v32  ;;  %v2170_v63 = vsel %vm400_vm10, %v284_v32, -3.4028235e+38  ;;  %v781_v25 = vmul.f32 %v1835_v46, %v280_v24 }
  0xda   :  { %451 = vmax.xlane.f32.xlu2 %v2029_v57  ;;  %804 = vadd.xlane.f32.xlu0 %v783_v56  ;;  %v863_v56 = vld [vmem:[#allocation5 + $0x28] sm:$0xff]  ;;  %v912_v0 = vadd.f32 %v2111_v21, %v864_v23  ;;  %v914_v61 = vadd.f32 %v891_v38, %v866_v2  ;;  %v872_v21 = vld [vmem:[#allocation5 + $0x70] sm:$0xff]  ;;  %v889_v12 = vpop.xlane.xlu1 %888 }
  0xdb   :  { %445 = vmax.xlane.f32.xlu1 %v2034_v34  ;;  %v911_v46 = vadd.f32 %v2104_v9, %v863_v56 }
  0xdc   :  { %928 = vst.msk [vmem:[#allocation5 + $0x30] sm:$0xff] %vm18_vm8, %v912_v0  ;;  %v762_v0 = vld [vmem:[#allocation4] sm:$0xff] }
  0xdd   :  { %v274_v33 = vpop.f32.mrf.mxu3  ;;  %v262_v18 = vpop.f32.mrf.mxu2  ;;  %927 = vst.msk [vmem:[#allocation5 + $0x28] sm:$0xff] %vm18_vm8, %v911_v46 }
  0xde   :  { %v2141_v37 = vmul.f32 10.0, %v274_v33  ;;  %v2175_v51 = vmul.f32 10.0, %v262_v18  ;;  %930 = vst.msk [vmem:[#allocation5 + $0x40] sm:$0xff] %vm18_vm8, %v914_v61  ;;  %v873_v33 = vld [vmem:[#allocation5 + $0x78] sm:$0xff]  ;;  %v871_v18 = vld [vmem:[#allocation5 + $0x68] sm:$0xff]  ;;  %v770_v61 = vld [vmem:[#allocation4 + $0x40] sm:$0xff] }
  0xe0   :  { %v893_v22 = vpop.xlane.xlu0 %892  ;;  %v2158_v31 = vsel %vm408_vm6, %v2141_v37, -3.4028235e+38  ;;  %v897_v50 = vpop.xlane.xlu2 %896  ;;  %v2188_v55 = vsel %vm404_vm9, %v2175_v51, -3.4028235e+38 }
  0xe2   :  { %796 = vadd.xlane.f32.xlu2 %v779_v6  ;;  %459 = vmax.xlane.f32.xlu0 %v2054_v4  ;;  %v862_v6 = vld [vmem:[#allocation5 + $0x20] sm:$0xff] }
  0xe3   :  { %806 = vadd.xlane.f32.xlu1 %v784_v5  ;;  %v867_v5 = vld [vmem:[#allocation5 + $0x48] sm:$0xff]  ;;  %v910_v59 = vadd.f32 %v883_v58, %v862_v6  ;;  %v766_v6 = vld [vmem:[#allocation4 + $0x20] sm:$0xff] }
  0xe4   :  { %v915_v7 = vadd.f32 %v893_v22, %v867_v5 }
  0xe5   :  { %926 = vst.msk [vmem:[#allocation5 + $0x20] sm:$0xff] %vm18_vm8, %v910_v59 }
  0xe6   :  { %931 = vst.msk [vmem:[#allocation5 + $0x48] sm:$0xff] %vm18_vm8, %v915_v7 }
  0xe8   :  { %v899_v49 = vpop.xlane.xlu0 %898  ;;  %v903_v1 = vpop.xlane.xlu2 %902 }
  0xe9   :  { %v918_v9 = vadd.f32 %v899_v49, %v870_v30  ;;  %v920_v38 = vadd.f32 %v903_v1, %v872_v21  ;;  %v1626_v49 = vmov 0  }
  0xea   :  { %812 = vadd.xlane.f32.xlu2 %v787_v48  ;;  %453 = vmax.xlane.f32.xlu0 %v2087_v11  ;;  %v917_v48 = vadd.f32 %v897_v50, %v869_v8 }
  0xeb   :  { %461 = vmax.xlane.f32.xlu1 %v2093_v14  ;;  %934 = vst.msk [vmem:[#allocation5 + $0x60] sm:$0xff] %vm18_vm8, %v918_v9  ;;  %1493 = vset.pattern.permute.xlu0 %v1626_v49 }
  0xec   :  { %933 = vst.msk [vmem:[#allocation5 + $0x58] sm:$0xff] %vm18_vm8, %v917_v48  ;;  %1492 = vset.pattern.permute.xlu1 %v1626_v49  ;;  %1494 = vset.pattern.permute.xlu2 %v1626_v49 }
  0xed   :  { %936 = vst.msk [vmem:[#allocation5 + $0x70] sm:$0xff] %vm18_vm8, %v920_v38 }
  0xf0   :  { %v905_v24 = vpop.xlane.xlu0 %904 }
  0xf1   :  { %v921_v22 = vadd.f32 %v905_v24, %v873_v33 }
  0xf2   :  { %469 = vmax.xlane.f32.xlu2 %v2126_v27  ;;  %798 = vadd.xlane.f32.xlu0 %v780_v26  ;;  %v865_v26 = vld [vmem:[#allocation5 + $0x38] sm:$0xff] }
  0xf3   :  { %447 = vmax.xlane.f32.xlu1 %v2130_v36  ;;  %v913_v32 = vadd.f32 %v889_v12, %v865_v26  ;;  %937 = vst.msk [vmem:[#allocation5 + $0x78] sm:$0xff] %vm18_vm8, %v921_v22 }
  0xf5   :  { %929 = vst.msk [vmem:[#allocation5 + $0x38] sm:$0xff] %vm18_vm8, %v913_v32 }
  0xfa   :  { %808 = vadd.xlane.f32.xlu2 %v785_v40  ;;  %471 = vmax.xlane.f32.xlu0 %v2158_v31  ;;  %v895_v40 = vpop.xlane.xlu1 %894 }
  0xfb   :  { %455 = vmax.xlane.f32.xlu1 %v2170_v63  ;;  %v916_v43 = vadd.f32 %v895_v40, %v868_v41 }
  0xfd   :  { %932 = vst.msk [vmem:[#allocation5 + $0x50] sm:$0xff] %vm18_vm8, %v916_v43 }
 0x102   :  { %463 = vmax.xlane.f32.xlu2 %v2188_v55  ;;  %v901_v44 = vpop.xlane.xlu1 %900 }
 0x103   :  { %800 = vadd.xlane.f32.xlu1 %v781_v25  ;;  %v919_v50 = vadd.f32 %v901_v44, %v871_v18  ;;  %v1625_v25 = vmov -3.4028235e+38  }
 0x104   :  { %23 = vst.msk [vmem:[#allocation2 + $0x20] sm:$0xff] %vm18_vm8, %v1625_v25 }
 0x105   :  { %935 = vst.msk [vmem:[#allocation5 + $0x68] sm:$0xff] %vm18_vm8, %v919_v50 }
 0x106   :  { %19 = vst.msk [vmem:[#allocation2] sm:$0xff] %vm18_vm8, %v1625_v25 }
 0x107   :  { %20 = vst.msk [vmem:[#allocation2 + $0x8] sm:$0xff] %vm18_vm8, %v1625_v25 }
 0x108   :  { %21 = vst.msk [vmem:[#allocation2 + $0x10] sm:$0xff] %vm18_vm8, %v1625_v25 }
 0x109   :  { %22 = vst.msk [vmem:[#allocation2 + $0x18] sm:$0xff] %vm18_vm8, %v1625_v25 }
 0x10a   :  { %24 = vst.msk [vmem:[#allocation2 + $0x28] sm:$0xff] %vm18_vm8, %v1625_v25 }
 0x10b   :  { %25 = vst.msk [vmem:[#allocation2 + $0x30] sm:$0xff] %vm18_vm8, %v1625_v25  ;;  %v2226_v62 = vld [vmem:[#allocation2 + $0x20] sm:$0xff] }
 0x10c   :  { %26 = vst.msk [vmem:[#allocation2 + $0x38] sm:$0xff] %vm18_vm8, %v1625_v25 }
 0x10d   :  { %27 = vst.msk [vmem:[#allocation2 + $0x40] sm:$0xff] %vm18_vm8, %v1625_v25  ;;  %v2230_v56 = vld [vmem:[#allocation2] sm:$0xff] }
 0x10e   :  { %28 = vst.msk [vmem:[#allocation2 + $0x48] sm:$0xff] %vm18_vm8, %v1625_v25  ;;  %v2270_v26 = vld [vmem:[#allocation2 + $0x8] sm:$0xff] }
 0x10f   :  { %29 = vst.msk [vmem:[#allocation2 + $0x50] sm:$0xff] %vm18_vm8, %v1625_v25  ;;  %v2299_v49 = vld [vmem:[#allocation2 + $0x10] sm:$0xff] }
 0x110   :  { %30 = vst.msk [vmem:[#allocation2 + $0x58] sm:$0xff] %vm18_vm8, %v1625_v25 }
 0x111   :  { %31 = vst.msk [vmem:[#allocation2 + $0x60] sm:$0xff] %vm18_vm8, %v1625_v25  ;;  %v2297_v50 = vld [vmem:[#allocation2 + $0x28] sm:$0xff] }
 0x112   :  { %32 = vst.msk [vmem:[#allocation2 + $0x68] sm:$0xff] %vm18_vm8, %v1625_v25 }
 0x113   :  { %33 = vst.msk [vmem:[#allocation2 + $0x70] sm:$0xff] %vm18_vm8, %v1625_v25 }
 0x114   :  { %34 = vst.msk [vmem:[#allocation2 + $0x78] sm:$0xff] %vm18_vm8, %v1625_v25  ;;  %v2268_v24 = vld [vmem:[#allocation2 + $0x40] sm:$0xff]  ;;  %v767_v25 = vld [vmem:[#allocation4 + $0x28] sm:$0xff] }
 0x118   :  { %v2256_v1 = vld [vmem:[#allocation2 + $0x60] sm:$0xff] }
 0x119   :  { %v2272_v12 = vld [vmem:[#allocation2 + $0x68] sm:$0xff] }
 0x135   :  { %v450_v58 = vpop.xlane.xlu2 %449  ;;  %v442_v60 = vpop.xlane.xlu0 %441 }
 0x136   :  { %v2234_v23 = vmax.f32 %v2226_v62, %v450_v58  ;;  %v2238_v47 = vmax.f32 %v2230_v56, %v442_v60  ;;  %v795_v46 = vpop.xlane.xlu1 %794 }
 0x137   :  { %v826_v5 = vadd.f32 %v795_v46, %v762_v0 }
 0x138   :  { %942 = vst.msk [vmem:[#allocation2 + $0x20] sm:$0xff] %vm18_vm8, %v2234_v23  ;;  %571 = vperm.xlu1 %1492, %v2238_v47  }
 0x139   :  { %938 = vst.msk [vmem:[#allocation2] sm:$0xff] %vm18_vm8, %v2238_v47 }
 0x13a   :  { %842 = vst.msk [vmem:[#allocation4] sm:$0xff] %vm18_vm8, %v826_v5 }
 0x13d   :  { %v803_v7 = vpop.xlane.xlu2 %802  ;;  %v466_v8 = vpop.xlane.xlu0 %465 }
 0x13e   :  { %v830_v59 = vadd.f32 %v803_v7, %v766_v6  ;;  %v811_v30 = vpop.xlane.xlu1 %810  ;;  %v2260_v9 = vmax.f32 %v2256_v1, %v466_v8  ;;  %v763_v8 = vld [vmem:[#allocation4 + $0x8] sm:$0xff] }
 0x13f   :  { %v834_v48 = vadd.f32 %v811_v30, %v770_v61  ;;  %v768_v30 = vld [vmem:[#allocation4 + $0x30] sm:$0xff] }
 0x140   :  { %846 = vst.msk [vmem:[#allocation4 + $0x20] sm:$0xff] %vm18_vm8, %v830_v59  ;;  %591 = vperm.xlu1 %1492, %v2234_v23   ;;  %631 = vperm.xlu0 %1493, %v2260_v9   ;;  %v2317_v59 = vld [vmem:[#allocation2 + $0x48] sm:$0xff] }
 0x141   :  { %850 = vst.msk [vmem:[#allocation4 + $0x40] sm:$0xff] %vm18_vm8, %v834_v48 }
 0x142   :  { %950 = vst.msk [vmem:[#allocation2 + $0x60] sm:$0xff] %vm18_vm8, %v2260_v9 }
 0x145   :  { %v458_v33 = vpop.xlane.xlu2 %457  ;;  %v444_v32 = vpop.xlane.xlu0 %443 }
 0x146   :  { %v2275_v38 = vmax.f32 %v2268_v24, %v458_v33  ;;  %v2278_v22 = vmax.f32 %v2270_v26, %v444_v32  ;;  %v468_v40 = vpop.xlane.xlu1 %467 }
 0x147   :  { %v2281_v41 = vmax.f32 %v2272_v12, %v468_v40 }
 0x148   :  { %946 = vst.msk [vmem:[#allocation2 + $0x40] sm:$0xff] %vm18_vm8, %v2275_v38  ;;  %576 = vperm.xlu2 %1494, %v2278_v22   ;;  %611 = vperm.xlu1 %1492, %v2275_v38  }
 0x149   :  { %939 = vst.msk [vmem:[#allocation2 + $0x8] sm:$0xff] %vm18_vm8, %v2278_v22 }
 0x14a   :  { %951 = vst.msk [vmem:[#allocation2 + $0x68] sm:$0xff] %vm18_vm8, %v2281_v41 }
 0x14d   :  { %v452_v58 = vpop.xlane.xlu2 %451  ;;  %v805_v60 = vpop.xlane.xlu0 %804 }
 0x14e   :  { %v2302_v46 = vmax.f32 %v2297_v50, %v452_v58  ;;  %v831_v0 = vadd.f32 %v805_v60, %v767_v25  ;;  %v446_v5 = vpop.xlane.xlu1 %445 }
 0x14f   :  { %v2305_v6 = vmax.f32 %v2299_v49, %v446_v5  ;;  %v2330_v5 = vld [vmem:[#allocation2 + $0x30] sm:$0xff] }
 0x150   :  { %943 = vst.msk [vmem:[#allocation2 + $0x28] sm:$0xff] %vm18_vm8, %v2302_v46  ;;  %596 = vperm.xlu2 %1494, %v2302_v46  }
 0x151   :  { %847 = vst.msk [vmem:[#allocation4 + $0x28] sm:$0xff] %vm18_vm8, %v831_v0  ;;  %v771_v0 = vld [vmem:[#allocation4 + $0x48] sm:$0xff] }
 0x152   :  { %940 = vst.msk [vmem:[#allocation2 + $0x10] sm:$0xff] %vm18_vm8, %v2305_v6 }
 0x153   :  { %3234 = vst [vmem:[#allocation6_spill] sm:$0xff] %v2330_v5 }
 0x155   :  { %v797_v48 = vpop.xlane.xlu2 %796  ;;  %v460_v33 = vpop.xlane.xlu0 %459 }
 0x156   :  { %v827_v32 = vadd.f32 %v797_v48, %v763_v8  ;;  %v2320_v40 = vmax.f32 %v2317_v59, %v460_v33  ;;  %v807_v25 = vpop.xlane.xlu1 %806  ;;  %v2332_v8 = vld [vmem:[#allocation2 + $0x50] sm:$0xff] }
 0x157   :  { %v832_v58 = vadd.f32 %v807_v25, %v768_v30 }
 0x158   :  { %843 = vst.msk [vmem:[#allocation4 + $0x8] sm:$0xff] %vm18_vm8, %v827_v32  ;;  %636 = vperm.xlu2 %1494, %v2281_v41   ;;  %616 = vperm.xlu0 %1493, %v2320_v40  }
 0x159   :  { %947 = vst.msk [vmem:[#allocation2 + $0x48] sm:$0xff] %vm18_vm8, %v2320_v40 }
 0x15a   :  { %848 = vst.msk [vmem:[#allocation4 + $0x30] sm:$0xff] %vm18_vm8, %v832_v58 }
 0x15d   :  { %v813_v30 = vpop.xlane.xlu2 %812  ;;  %v454_v48 = vpop.xlane.xlu0 %453 }
 0x15e   :  { %v835_v33 = vadd.f32 %v813_v30, %v771_v0  ;;  %v2335_v32 = vmax.f32 %v2330_v5, %v454_v48  ;;  %v462_v25 = vpop.xlane.xlu1 %461  ;;  %v2352_v30 = vld [vmem:[#allocation2 + $0x70] sm:$0xff] }
 0x15f   :  { %v2338_v7 = vmax.f32 %v2332_v8, %v462_v25  ;;  %3236 = vst [vmem:[#allocation8_spill] sm:$0xff] %v2352_v30  ;;  %v764_v48 = vld [vmem:[#allocation4 + $0x10] sm:$0xff] }
 0x160   :  { %3235 = vst [vmem:[#allocation7_spill] sm:$0xff] %v2335_v32  ;;  %581 = vperm.xlu0 %1493, %v2305_v6   ;;  %601 = vperm.xlu1 %1492, %v2335_v32  }
 0x161   :  { %851 = vst.msk [vmem:[#allocation4 + $0x48] sm:$0xff] %vm18_vm8, %v835_v33  ;;  %621 = vperm.xlu2 %1494, %v2338_v7   ;;  %v2354_v33 = vld [vmem:[#allocation2 + $0x18] sm:$0xff] }
 0x162   :  { %944 = vst.msk [vmem:[#allocation2 + $0x30] sm:$0xff] %vm18_vm8, %v2335_v32 }
 0x163   :  { %948 = vst.msk [vmem:[#allocation2 + $0x50] sm:$0xff] %vm18_vm8, %v2338_v7 }
 0x164   :  { %3237 = vst [vmem:[#allocation9_spill] sm:$0xff] %v2354_v33 }
 0x165   :  { %v470_v25 = vpop.xlane.xlu2 %469  ;;  %v799_v58 = vpop.xlane.xlu0 %798 }
 0x166   :  { %v2357_v60 = vmax.f32 %v2352_v30, %v470_v25  ;;  %v828_v44 = vadd.f32 %v799_v58, %v764_v48  ;;  %v448_v61 = vpop.xlane.xlu1 %447  ;;  %v2373_v58 = vld [vmem:[#allocation2 + $0x78] sm:$0xff] }
 0x167   :  { %v2360_v43 = vmax.f32 %v2354_v33, %v448_v61  ;;  %v769_v61 = vld [vmem:[#allocation4 + $0x38] sm:$0xff]  ;;  %3240 = vst [vmem:[#allocation12_spill] sm:$0xff] %v2373_v58 }
 0x168   :  { %3238 = vst [vmem:[#allocation10_spill] sm:$0xff] %v2357_v60  ;;  %641 = vperm.xlu1 %1492, %v2357_v60   ;;  %v2375_v48 = vld [vmem:[#allocation2 + $0x38] sm:$0xff] }
 0x169   :  { %3239 = vst [vmem:[#allocation11_spill] sm:$0xff] %v2360_v43  ;;  %586 = vperm.xlu2 %1494, %v2360_v43  }
 0x16a   :  { %952 = vst.msk [vmem:[#allocation2 + $0x70] sm:$0xff] %vm18_vm8, %v2357_v60 }
 0x16b   :  { %844 = vst.msk [vmem:[#allocation4 + $0x10] sm:$0xff] %vm18_vm8, %v828_v44 }
 0x16c   :  { %941 = vst.msk [vmem:[#allocation2 + $0x18] sm:$0xff] %vm18_vm8, %v2360_v43 }
 0x16d   :  { %3241 = vst [vmem:[#allocation13_spill] sm:$0xff] %v2375_v48  ;;  %v809_v25 = vpop.xlane.xlu2 %808  ;;  %v472_v0 = vpop.xlane.xlu0 %471 }
 0x16e   :  { %v833_v21 = vadd.f32 %v809_v25, %v769_v61  ;;  %v2378_v2 = vmax.f32 %v2373_v58, %v472_v0  ;;  %v456_v44 = vpop.xlane.xlu1 %455  ;;  %v2394_v0 = vld [vmem:[#allocation2 + $0x58] sm:$0xff] }
 0x16f   :  { %v2381_v3 = vmax.f32 %v2375_v48, %v456_v44  ;;  %3244 = vst [vmem:[#allocation16_spill] sm:$0xff] %v2394_v0  ;;  %v765_v25 = vld [vmem:[#allocation4 + $0x18] sm:$0xff] }
 0x170   :  { %3242 = vst [vmem:[#allocation14_spill] sm:$0xff] %v2378_v2  ;;  %646 = vperm.xlu0 %1493, %v2378_v2  }
 0x171   :  { %3243 = vst [vmem:[#allocation15_spill] sm:$0xff] %v2381_v3  ;;  %606 = vperm.xlu2 %1494, %v2381_v3  }
 0x172   :  { %849 = vst.msk [vmem:[#allocation4 + $0x38] sm:$0xff] %vm18_vm8, %v833_v21 }
 0x173   :  { %953 = vst.msk [vmem:[#allocation2 + $0x78] sm:$0xff] %vm18_vm8, %v2378_v2 }
 0x174   :  { %945 = vst.msk [vmem:[#allocation2 + $0x38] sm:$0xff] %vm18_vm8, %v2381_v3 }
 0x175   :  { %v464_v21 = vpop.xlane.xlu2 %463 }
 0x176   :  { %v2397_v44 = vmax.f32 %v2394_v0, %v464_v21  ;;  %v801_v18 = vpop.xlane.xlu1 %800 }
 0x177   :  { %v829_v58 = vadd.f32 %v801_v18, %v765_v25 }
 0x178   :  { %3245 = vst [vmem:[#allocation17_spill] sm:$0xff] %v2397_v44  ;;  %626 = vperm.xlu1 %1492, %v2397_v44  }
 0x179   :  { %949 = vst.msk [vmem:[#allocation2 + $0x58] sm:$0xff] %vm18_vm8, %v2397_v44 }
 0x17a   :  { %845 = vst.msk [vmem:[#allocation4 + $0x18] sm:$0xff] %vm18_vm8, %v829_v58 }
 0x1a2   :  { %v577_v61 = vpop.permute.xlu2 %576 }
 0x1a3   :  { %v650_v44 = vsub.f32 %v2004_v53, %v577_v61 }
 0x1aa   :  { %v597_v43 = vpop.permute.xlu2 %596  ;;  %v572_v33 = vpop.permute.xlu1 %571 }
 0x1ab   :  { %v649_v60 = vsub.f32 %v1979_v29, %v572_v33 }
 0x1ad   :  { %v665_v30 = vmul.f32 1.442695, %v649_v60 }
 0x1af   :  { %1495 = vpow2.f32 %v665_v30  ;;  %v667_v30 = vmul.f32 1.442695, %v650_v44 }
 0x1b2   :  { %v637_v21 = vpop.permute.xlu2 %636  ;;  %v592_v32 = vpop.permute.xlu1 %591 }
 0x1b3   :  { %v653_v18 = vsub.f32 %v1977_v28, %v592_v32  ;;  %v632_v25 = vpop.permute.xlu0 %631  ;;  %v654_v28 = vsub.f32 %v2029_v57, %v597_v43 }
 0x1b4   :  { %v661_v5 = vsub.f32 %v1989_v42, %v632_v25  ;;  %v662_v42 = vsub.f32 %v2007_v54, %v637_v21 }
 0x1b5   :  { %v673_v2 = vmul.f32 1.442695, %v653_v18  ;;  %v1496_v0 = vpop.eup %1495  ;;  %v675_v53 = vmul.f32 1.442695, %v654_v28 }
 0x1b6   :  { %697 = vadd.xlane.f32.xlu2 %v1496_v0  ;;  %v689_v58 = vmul.f32 1.442695, %v661_v5 }
 0x1b7   :  { %1497 = vpow2.f32 %v673_v2  ;;  %v691_v2 = vmul.f32 1.442695, %v662_v42 }
 0x1b8   :  { %1499 = vpow2.f32 %v689_v58 }
 0x1ba   :  { %v612_v3 = vpop.permute.xlu1 %611 }
 0x1bb   :  { %v657_v29 = vsub.f32 %v2002_v52, %v612_v3  ;;  %v622_v60 = vpop.permute.xlu2 %621 }
 0x1bc   :  { %v659_v52 = vsub.f32 %v2093_v14, %v622_v60 }
 0x1bd   :  { %v681_v33 = vmul.f32 1.442695, %v657_v29  ;;  %v1498_v48 = vpop.eup %1497 }
 0x1be   :  { %705 = vadd.xlane.f32.xlu1 %v1498_v48  ;;  %v1500_v32 = vpop.eup %1499  ;;  %v685_v43 = vmul.f32 1.442695, %v659_v52 }
 0x1bf   :  { %1501 = vpow2.f32 %v681_v33  ;;  %721 = vadd.xlane.f32.xlu0 %v1500_v32 }
 0x1c0   :  { %1503 = vpow2.f32 %v667_v30 }
 0x1c1   :  { %1505 = vpow2.f32 %v675_v53 }
 0x1c2   :  { %1507 = vpow2.f32 %v691_v2 }
 0x1c3   :  { %v587_v5 = vpop.permute.xlu2 %586 }
 0x1c5   :  { %v1502_v61 = vpop.eup %1501 }
 0x1c6   :  { %v1504_v0 = vpop.eup %1503  ;;  %713 = vadd.xlane.f32.xlu2 %v1502_v61  ;;  %v652_v61 = vsub.f32 %v2130_v36, %v587_v5 }
 0x1c7   :  { %699 = vadd.xlane.f32.xlu1 %v1504_v0  ;;  %v1506_v48 = vpop.eup %1505 }
 0x1c8   :  { %v1508_v54 = vpop.eup %1507 }
 0x1ca   :  { %v617_v3 = vpop.permute.xlu0 %616 }
 0x1cb   :  { %v658_v57 = vsub.f32 %v2054_v4, %v617_v3  ;;  %v607_v18 = vpop.permute.xlu2 %606 }
 0x1cc   :  { %v656_v21 = vsub.f32 %v2170_v63, %v607_v18  ;;  %v791_v18 = vmul.f32 %v1959_v19, %v2000_v45  ;;  %v3246_v19 = vsub.f32 %v2230_v56, %v2238_v47  ;;  %v3249_v47 = vsub.f32 %v2226_v62, %v2234_v23 }
 0x1cd   :  { %v683_v44 = vmul.f32 1.442695, %v658_v57 }
 0x1ce   :  { %707 = vadd.xlane.f32.xlu2 %v1506_v48  ;;  %v679_v30 = vmul.f32 1.442695, %v656_v21  ;;  %v505_v45 = vmul.f32 1.442695, %v3246_v19 }
 0x1cf   :  { %1509 = vpow2.f32 %v683_v44  ;;  %723 = vadd.xlane.f32.xlu1 %v1508_v54 }
 0x1d0   :  { %1511 = vpow2.f32 %v685_v43  ;;  %v789_v43 = vmul.f32 %v1929_v10, %v2175_v51  ;;  %v788_v10 = vmul.f32 %v1938_v13, %v2075_v35 }
 0x1d2   :  { %v582_v25 = vpop.permute.xlu0 %581  ;;  %v602_v58 = vpop.permute.xlu1 %601 }
 0x1d3   :  { %v651_v29 = vsub.f32 %v2034_v34, %v582_v25  ;;  %v655_v4 = vsub.f32 %v2087_v11, %v602_v58  ;;  %v671_v34 = vmul.f32 1.442695, %v652_v61  ;;  %v2451_v58 = vld [vmem:[#allocation5 + $0x30] sm:$0xff] }
 0x1d4   :  { %3248 = vst [vmem:[#allocation19_spill] sm:$0xff] %v2451_v58 }
 0x1d5   :  { %v1510_v14 = vpop.eup %1509  ;;  %v669_v60 = vmul.f32 1.442695, %v651_v29  ;;  %v677_v28 = vmul.f32 1.442695, %v655_v4  ;;  %v2468_v4 = vld [vmem:[#allocation5 + $0x40] sm:$0xff] }
 0x1d6   :  { %v1512_v33 = vpop.eup %1511  ;;  %715 = vadd.xlane.f32.xlu0 %v1510_v14  ;;  %v2462_v14 = vadd.f32 1.1754944e-38, %v2451_v58 }
 0x1d7   :  { %1513 = vpow2.f32 %v669_v60  ;;  %717 = vadd.xlane.f32.xlu1 %v1512_v33  ;;  %v2464_v60 = vld [vmem:[#allocation5 + $0x8] sm:$0xff] }
 0x1d8   :  { %1515 = vpow2.f32 %v679_v30  ;;  %v513_v30 = vmul.f32 1.442695, %v3249_v47 }
 0x1d9   :  { %1517 = vpow2.f32 %v677_v28  ;;  %v3250_v28 = vsub.f32 %v2256_v1, %v2260_v9  ;;  %v2486_v1 = vadd.f32 1.1754944e-38, %v2468_v4 }
 0x1da   :  { %v642_v32 = vpop.permute.xlu1 %641 }
 0x1db   :  { %v663_v42 = vsub.f32 %v2126_v27, %v642_v32  ;;  %v529_v32 = vmul.f32 1.442695, %v3250_v28  ;;  %vm1242_vm3 = vweird.f32 %v2486_v1 }
 0x1dd   :  { %v1514_v53 = vpop.eup %1513  ;;  %v693_v63 = vmul.f32 1.442695, %v663_v42  ;;  %v537_v42 = vld [vmem:[#allocation3] sm:$0xff] }
 0x1de   :  { %v1516_v2 = vpop.eup %1515  ;;  %701 = vadd.xlane.f32.xlu0 %v1514_v53  ;;  %v2474_v53 = vld [vmem:[#allocation5 + $0x20] sm:$0xff] }
 0x1df   :  { %1519 = vpow2.f32 %v693_v63  ;;  %711 = vadd.xlane.f32.xlu1 %v1516_v2  ;;  %v1518_v52 = vpop.eup %1517  ;;  %v2478_v2 = vadd.f32 1.1754944e-38, %v2464_v60 }
 0x1e0   :  { %1521 = vpow2.f32 %v671_v34 }
 0x1e1   :  { %v1143_v61 = vand.u32 2147483648, %v2478_v2  ;;  %vm1137_vm14 = vweird.f32 %v2478_v2 }
 0x1e2   :  { %v647_v0 = vpop.permute.xlu0 %646 }
 0x1e3   :  { %v664_v11 = vsub.f32 %v2158_v31, %v647_v0  ;;  %v792_v31 = vmul.f32 %v1953_v17, %v2107_v15  ;;  %v793_v17 = vmul.f32 %v1968_v20, %v2141_v37  ;;  %v2433_v15 = vld [vmem:[#allocation5] sm:$0xff]  ;;  %v2447_v37 = vld [vmem:[#allocation5 + $0x28] sm:$0xff]  ;;  %v2491_v0 = vadd.f32 1.1754944e-38, %v2474_v53 }
 0x1e4   :  { %v1101_v54 = vadd.f32 1.1754944e-38, %v2433_v15  ;;  %v2454_v29 = vadd.f32 1.1754944e-38, %v2447_v37 }
 0x1e5   :  { %v1520_v3 = vpop.eup %1519  ;;  %v695_v57 = vmul.f32 1.442695, %v664_v11  ;;  %vm1182_vm6 = vweird.f32 %v2491_v0 }
 0x1e6   :  { %709 = vadd.xlane.f32.xlu0 %v1518_v52  ;;  %725 = vadd.xlane.f32.xlu2 %v1520_v3  ;;  %v1522_v5 = vpop.eup %1521  ;;  %vm1122_vm7 = vweird.f32 %v1101_v54  ;;  %v1126_v62 = vand.u32 2147483647, %v1101_v54  ;;  %v1128_v23 = vand.u32 2147483648, %v1101_v54  ;;  %vm1197_vm9 = vweird.f32 %v2454_v29 }
 0x1e7   :  { %1523 = vpow2.f32 %v695_v57  ;;  %816 = vadd.xlane.f32.xlu1 %v789_v43  ;;  %v3255_v57 = vsub.f32 %v2268_v24, %v2275_v38 }
 0x1e8   :  { %vm2493_vm13 = vcmp.eq.f32.partialorder %v1126_v62, 8.507059e+37  ;;  %v1129_v3 = vor.u32 1.1754944e-38, %v1128_v23 }
 0x1e9   :  { %v521_v43 = vmul.f32 1.442695, %v3255_v57 }
 0x1ea   :  { %v627_v27 = vpop.permute.xlu1 %626 }
 0x1eb   :  { %v660_v36 = vsub.f32 %v2188_v55, %v627_v27  ;;  %v790_v55 = vmul.f32 %v1948_v16, %v1985_v39  ;;  %v2442_v16 = vld [vmem:[#allocation5 + $0x10] sm:$0xff]  ;;  %v1056_v39 = vld [vmem:[#allocation5 + $0x18] sm:$0xff] }
 0x1ec   :  { %3247 = vst [vmem:[#allocation18_spill] sm:$0xff] %v2442_v16  ;;  %v2445_v20 = vadd.f32 1.1754944e-38, %v2442_v16  ;;  %v2449_v25 = vadd.f32 1.1754944e-38, %v1056_v39  ;;  %v549_v39 = vld [vmem:[#allocation3 + $0x60] sm:$0xff] }
 0x1ed   :  { %v1524_v48 = vpop.eup %1523  ;;  %v687_v44 = vmul.f32 1.442695, %v660_v36 }
 0x1ee   :  { %727 = vadd.xlane.f32.xlu0 %v1524_v48  ;;  %703 = vadd.xlane.f32.xlu2 %v1522_v5  ;;  %v1158_v5 = vand.u32 2147483648, %v2445_v20  ;;  %v3256_v48 = vsub.f32 %v2270_v26, %v2278_v22  ;;  %v1173_v38 = vand.u32 2147483648, %v2449_v25  ;;  %v541_v26 = vld [vmem:[#allocation3 + $0x20] sm:$0xff] }
 0x1ef   :  { %1525 = vpow2.f32 %v687_v44  ;;  %822 = vadd.xlane.f32.xlu1 %v792_v31 }
 0x1f0   :  { %1527 = vrcp.f32 %v1101_v54  ;;  %v507_v44 = vmul.f32 1.442695, %v3256_v48  ;;  %v3259_v48 = vsub.f32 %v2272_v12, %v2281_v41  ;;  %v3266_v41 = vld [vmem:[#allocation13_spill] sm:$0xff]  ;;  %v3267_v12 = vld [vmem:[#allocation15_spill] sm:$0xff] }
 0x1f1   :  { %1529 = vpow2.f32 %v505_v45  ;;  %v1218_v45 = vand.u32 2147483648, %v2462_v14 }
 0x1f2   :  { %1531 = vrcp.f32 %v2445_v20 }
 0x1f3   :  { %1533 = vrcp.f32 %v2449_v25 }
 0x1f4   :  { %1535 = vrcp.f32 %v2454_v29 }
 0x1f5   :  { %v1526_v51 = vpop.eup %1525  ;;  %1537 = vpow2.f32 %v513_v30 }
 0x1f6   :  { %814 = vadd.xlane.f32.xlu0 %v788_v10  ;;  %719 = vadd.xlane.f32.xlu2 %v1526_v51  ;;  %v2436_v13 = vpop.eup %1527  ;;  %1539 = vrcp.f32 %v2462_v14 }
 0x1f7   :  { %v1118_v35 = vmul.f32 %v2436_v13, %v1101_v54  ;;  %v1530_v33 = vpop.eup %1529  ;;  %vm1123_vm12 = vweird.f32 %v2436_v13  ;;  %1541 = vpow2.f32 %v529_v32 }
 0x1f8   :  { %vm2480_vm11 = vmor %vm1122_vm7, %vm1123_vm12  ;;  %v553_v9 = vmul.f32 %v1530_v33, %v537_v42  ;;  %v2488_v34 = vpop.eup %1531  ;;  %1543 = vrcp.f32 %v2478_v2  ;;  %vm1152_vm12 = vweird.f32 %v2445_v20 }
 0x1f9   :  { %v1119_v21 = vsub.f32 1.0, %v1118_v35  ;;  %v2500_v36 = vpop.eup %1533  ;;  %v1148_v24 = vmul.f32 %v2488_v34, %v2445_v20  ;;  %1545 = vrcp.f32 %v2486_v1  ;;  %v2527_v35 = vor.u32 1.1754944e-38, %v1158_v5 }
 0x1fa   :  { %v2510_v10 = vpop.eup %1535  ;;  %1547 = vrcp.f32 %v2491_v0  ;;  %v1163_v19 = vmul.f32 %v2500_v36, %v2449_v25  ;;  %v1248_v5 = vand.u32 2147483648, %v2486_v1 }
 0x1fb   :  { %v1120_v56 = vmul.f32 %v2436_v13, %v1119_v21  ;;  %v1538_v51 = vpop.eup %1537  ;;  %1549 = vpow2.f32 %v521_v43  ;;  %v1149_v21 = vsub.f32 1.0, %v1148_v24  ;;  %v1193_v47 = vmul.f32 %v2510_v10, %v2454_v29 }
 0x1fc   :  { %v2519_v22 = vpop.eup %1539  ;;  %1551 = vpow2.f32 %v507_v44  ;;  %v557_v30 = vmul.f32 %v1538_v51, %v541_v26  ;;  %v1164_v43 = vsub.f32 1.0, %v1163_v19  ;;  %v531_v44 = vmul.f32 1.442695, %v3259_v48  ;;  %v545_v26 = vld [vmem:[#allocation3 + $0x40] sm:$0xff] }
 0x1fd   :  { %v1121_v63 = vadd.f32 %v2436_v13, %v1120_v56  ;;  %v2532_v56 = vor.u32 1.1754944e-38, %v1173_v38  ;;  %v1208_v42 = vmul.f32 %v2519_v22, %v2462_v14  ;;  %v1150_v51 = vmul.f32 %v2488_v34, %v1149_v21 }
 0x1fe   :  { %820 = vadd.xlane.f32.xlu0 %v791_v18  ;;  %818 = vadd.xlane.f32.xlu2 %v790_v55  ;;  %v1203_v18 = vand.u32 2147483648, %v2454_v29  ;;  %v2583_v48 = vor.u32 1.1754944e-38, %v1248_v5  ;;  %vm1198_vm7 = vweird.f32 %v2510_v10 }
 0x1ff   :  { %v1125_v31 = vsel %vm2480_vm11, %v2436_v13, %v1121_v63  ;;  %v1542_v13 = vpop.eup %1541  ;;  %3257 = vst [vmem:[#allocation20_spill] sm:$0xff] %v2532_v56  ;;  %v1209_v19 = vsub.f32 1.0, %v1208_v42  ;;  %v1165_v42 = vmul.f32 %v2500_v36, %v1164_v43  ;;  %v2589_v43 = vld [vmem:[#allocation5 + $0x60] sm:$0xff]  ;;  %vm1153_vm11 = vweird.f32 %v2488_v34 }
 0x200   :  { %v2525_v54 = vsel %vm2493_vm13, %v1129_v3, %v1125_v31  ;;  %v2536_v33 = vpop.eup %1543  ;;  %v2539_v32 = vor.u32 1.1754944e-38, %v1203_v18  ;;  %v565_v52 = vmul.f32 %v1542_v13, %v549_v39  ;;  %v538_v39 = vld [vmem:[#allocation3 + $0x8] sm:$0xff]  ;;  %3261 = vst [vmem:[#allocation22_spill] sm:$0xff] %v2589_v43  ;;  %v3288_v56 = vld [vmem:[#allocation10_spill] sm:$0xff] }
 0x201   :  { %v2544_v63 = vpop.eup %1545  ;;  %vm1138_vm0 = vweird.f32 %v2536_v33 }
 0x202   :  { %v2550_v57 = vpop.eup %1547  ;;  %v1238_v21 = vmul.f32 %v2544_v63, %v2486_v1  ;;  %vm1243_vm15 = vweird.f32 %v2544_v63  ;;  %vm2709_vm13 = vmor %vm1137_vm14, %vm1138_vm0 }
 0x203   :  { %v1550_v38 = vpop.eup %1549  ;;  %vm1183_vm2 = vweird.f32 %v2550_v57  ;;  %vm2724_vm14 = vmor %vm1242_vm3, %vm1243_vm15  ;;  %vm1167_vm15 = vweird.f32 %v2449_v25 }
 0x204   :  { %v1552_v13 = vpop.eup %1551  ;;  %vm2655_vm5 = vmor %vm1182_vm6, %vm1183_vm2  ;;  %vm1212_vm6 = vweird.f32 %v2462_v14  ;;  %vm1213_vm2 = vweird.f32 %v2519_v22 }
 0x206   :  { %824 = vadd.xlane.f32.xlu2 %v793_v17 }
 0x229   :  { %v698_v11 = vpop.xlane.xlu2 %697 }
 0x22a   :  { %v729_v27 = vadd.f32 %v698_v11, %v553_v9  ;;  %v3258_v9 = vsub.f32 %v2297_v50, %v2302_v46  ;;  %v1194_v50 = vsub.f32 1.0, %v1193_v47  ;;  %v2559_v46 = vld [vmem:[#allocation5 + $0x48] sm:$0xff]  ;;  %v1178_v47 = vmul.f32 %v2550_v57, %v2491_v0 }
 0x22c   :  { %746 = vst.msk [vmem:[#allocation3] sm:$0xff] %vm18_vm8, %v729_v27  ;;  %v515_v11 = vmul.f32 1.442695, %v3258_v9  ;;  %v2552_v27 = vor.u32 1.1754944e-38, %v1218_v45  ;;  %v1133_v45 = vmul.f32 %v2536_v33, %v2478_v2  ;;  %v2577_v9 = vadd.f32 1.1754944e-38, %v2559_v46 }
 0x22e   :  { %v1134_v17 = vsub.f32 1.0, %v1133_v45  ;;  %vm1257_vm0 = vweird.f32 %v2577_v9 }
 0x231   :  { %v706_v23 = vpop.xlane.xlu1 %705 }
 0x232   :  { %v733_v3 = vadd.f32 %v706_v23, %v557_v30  ;;  %v722_v24 = vpop.xlane.xlu0 %721  ;;  %v2566_v30 = vor.u32 1.1754944e-38, %v1143_v61  ;;  %v2572_v23 = vld [vmem:[#allocation5 + $0x58] sm:$0xff]  ;;  %v2580_v61 = vadd.f32 %v2488_v34, %v1150_v51  ;;  %v1179_v51 = vsub.f32 1.0, %v1178_v47 }
 0x233   :  { %v973_v31 = vld [vmem:[#allocation3] sm:$0xff]  ;;  %v741_v18 = vadd.f32 %v722_v24, %v565_v52  ;;  %3260 = vst [vmem:[#allocation21_spill] sm:$0xff] %v2572_v23  ;;  %v561_v52 = vmul.f32 %v1550_v38, %v545_v26  ;;  %v554_v24 = vmul.f32 %v1552_v13, %v538_v39  ;;  %v1239_v26 = vsub.f32 1.0, %v1238_v21 }
 0x234   :  { %1553 = vlog2.f32 %v973_v31  ;;  %750 = vst.msk [vmem:[#allocation3 + $0x20] sm:$0xff] %vm18_vm8, %v733_v3  ;;  %v1195_v3 = vmul.f32 %v2510_v10, %v1194_v50  ;;  %v3262_v50 = vsub.f32 %v2317_v59, %v2320_v40  ;;  %v2595_v13 = vadd.f32 %v2500_v36, %v1165_v42  ;;  %v957_v42 = vld [vmem:[#allocation2] sm:$0xff] }
 0x235   :  { %1555 = vpow2.f32 %v515_v11  ;;  %758 = vst.msk [vmem:[#allocation3 + $0x60] sm:$0xff] %vm18_vm8, %v741_v18  ;;  %v1210_v11 = vmul.f32 %v2519_v22, %v1209_v19  ;;  %v2587_v18 = vadd.f32 1.1754944e-38, %v2572_v23  ;;  %v3263_v19 = vsub.f32 %v2332_v8, %v2338_v7 }
 0x236   :  { %1557 = vpow2.f32 %v531_v44  ;;  %v523_v5 = vmul.f32 1.442695, %v3262_v50  ;;  %v2603_v47 = vadd.f32 %v2510_v10, %v1195_v3  ;;  %v1263_v59 = vand.u32 2147483648, %v2577_v9 }
 0x237   :  { %1559 = vrcp.f32 %v2577_v9  ;;  %v525_v45 = vmul.f32 1.442695, %v3263_v19  ;;  %v2607_v40 = vadd.f32 1.1754944e-38, %v2589_v43  ;;  %v2611_v8 = vadd.f32 %v2519_v22, %v1210_v11 }
 0x238   :  { %v1186_v11 = vand.u32 2147483647, %v2491_v0  ;;  %v3268_v23 = vsub.f32 %v3266_v41, %v3267_v12  ;;  %v961_v12 = vld [vmem:[#allocation2 + $0x20] sm:$0xff]  ;;  %v546_v41 = vld [vmem:[#allocation3 + $0x48] sm:$0xff] }
 0x239   :  { %v714_v31 = vpop.xlane.xlu2 %713 }
 0x23a   :  { %v737_v62 = vadd.f32 %v714_v31, %v561_v52  ;;  %v700_v44 = vpop.xlane.xlu1 %699  ;;  %v1554_v38 = vpop.eup %1553  ;;  %v542_v31 = vld [vmem:[#allocation3 + $0x28] sm:$0xff]  ;;  %v519_v43 = vmul.f32 1.442695, %v3268_v23  ;;  %vm2659_vm10 = vcmp.eq.f32.partialorder %v1186_v11, 8.507059e+37  ;;  %v3295_v11 = vld [vmem:[#allocation9_spill] sm:$0xff] }
 0x23b   :  { %v730_v55 = vadd.f32 %v700_v44, %v554_v24  ;;  %v990_v39 = vmul.f32 0.6931472, %v1554_v38  ;;  %v977_v52 = vld [vmem:[#allocation3 + $0x20] sm:$0xff]  ;;  %v1556_v21 = vpop.eup %1555  ;;  %v550_v44 = vld [vmem:[#allocation3 + $0x68] sm:$0xff]  ;;  %v2622_v38 = vld [vmem:[#allocation5 + $0x38] sm:$0xff] }
 0x23c   :  { %754 = vst.msk [vmem:[#allocation3 + $0x40] sm:$0xff] %vm18_vm8, %v737_v62  ;;  %1561 = vlog2.f32 %v977_v52  ;;  %v1558_v7 = vpop.eup %1557  ;;  %v1135_v62 = vmul.f32 %v2536_v33, %v1134_v17  ;;  %v1240_v17 = vmul.f32 %v2544_v63, %v1239_v26  ;;  %v558_v19 = vmul.f32 %v1556_v21, %v542_v31 }
 0x23d   :  { %747 = vst.msk [vmem:[#allocation3 + $0x8] sm:$0xff] %vm18_vm8, %v730_v55  ;;  %v1021_v24 = vadd.f32 %v990_v39, %v957_v42  ;;  %v1180_v55 = vmul.f32 %v2550_v57, %v1179_v51  ;;  %1563 = vpow2.f32 %v523_v5  ;;  %v2626_v39 = vor.u32 1.1754944e-38, %v1263_v59  ;;  %v1037_v51 = vld [vmem:[#allocation4] sm:$0xff]  ;;  %v2630_v28 = vpop.eup %1559 }
 0x23e   :  { %3264 = vst [vmem:[#allocation23_spill] sm:$0xff] %v2622_v38  ;;  %1565 = vpow2.f32 %v525_v45  ;;  %v1188_v52 = vand.u32 2147483648, %v2491_v0  ;;  %v566_v3 = vmul.f32 %v1558_v7, %v550_v44  ;;  %v2634_v5 = vadd.f32 1.1754944e-38, %v2622_v38 }
 0x23f   :  { %v1069_v50 = vmul.f32 %v2433_v15, %v1021_v24  ;;  %1567 = vrcp.f32 %v2587_v18  ;;  %v2637_v59 = vadd.f32 %v2550_v57, %v1180_v55  ;;  %v3265_v31 = vsub.f32 %v2299_v49, %v2305_v6 }
 0x240   :  { %1569 = vrcp.f32 %v2607_v40  ;;  %v3290_v6 = vand.u32 2147483647, %v2454_v29  ;;  %v3301_v29 = vand.u32 2147483647, %v2462_v14  ;;  %v966_v14 = vld [vmem:[#allocation2 + $0x48] sm:$0xff] }
 0x241   :  { %v708_v42 = vpop.xlane.xlu2 %707  ;;  %v1085_v26 = vsub.f32 %v1037_v51, %v1069_v50  ;;  %v509_v7 = vmul.f32 1.442695, %v3265_v31  ;;  %v547_v31 = vld [vmem:[#allocation3 + $0x50] sm:$0xff] }
 0x242   :  { %v734_v45 = vadd.f32 %v708_v42, %v558_v19  ;;  %v724_v15 = vpop.xlane.xlu1 %723  ;;  %v1562_v21 = vpop.eup %1561  ;;  %v2649_v42 = vadd.f32 %v2536_v33, %v1135_v62  ;;  %v3273_v62 = vand.u32 2147483647, %v2478_v2  ;;  %vm2752_vm3 = vcmp.eq.f32.partialorder %v3290_v6, 8.507059e+37 }
 0x243   :  { %v981_v24 = vld [vmem:[#allocation3 + $0x40] sm:$0xff]  ;;  %v742_v44 = vadd.f32 %v724_v15, %v566_v3  ;;  %v1131_v50 = vmul.f32 %v2525_v54, %v1085_v26  ;;  %v998_v19 = vmul.f32 0.6931472, %v1562_v21  ;;  %v1564_v55 = vpop.eup %1563  ;;  %v3276_v3 = vand.u32 2147483647, %v2486_v1  ;;  %v3287_v1 = vld [vmem:[#allocation8_spill] sm:$0xff] }
 0x244   :  { %1571 = vlog2.f32 %v981_v24  ;;  %v974_v51 = vld [vmem:[#allocation3 + $0x8] sm:$0xff]  ;;  %751 = vst.msk [vmem:[#allocation3 + $0x28] sm:$0xff] %vm18_vm8, %v734_v45  ;;  %v1566_v23 = vpop.eup %1565  ;;  %vm2667_vm1 = vcmp.eq.f32.partialorder %v3273_v62, 8.507059e+37  ;;  %v2679_v26 = vmul.f32 %v2630_v28, %v2577_v9  ;;  %v2682_v45 = vld [vmem:[#allocation5 + $0x70] sm:$0xff] }
 0x245   :  { %1573 = vlog2.f32 %v974_v51  ;;  %759 = vst.msk [vmem:[#allocation3 + $0x68] sm:$0xff] %vm18_vm8, %v742_v44  ;;  %vm2673_vm4 = vcmp.eq.f32.partialorder %v3276_v3, 8.507059e+37  ;;  %v1357_v15 = vsub.f32 0.0, %v1131_v50  ;;  %v1025_v21 = vadd.f32 %v998_v19, %v961_v12  ;;  %v2684_v24 = vpop.eup %1567  ;;  %v3284_v3 = vld [vmem:[#allocation6_spill] sm:$0xff] }
 0x246   :  { %1575 = vrcp.f32 %v2634_v5  ;;  %3279 = vst [vmem:[#allocation13_spill] sm:$0xff] %v2682_v45  ;;  %v2689_v44 = vadd.f32 %v2544_v63, %v1240_v17  ;;  %v1189_v51 = vor.u32 1.1754944e-38, %v1188_v52  ;;  %v1185_v50 = vsel %vm2655_vm5, %v2550_v57, %v2637_v59  ;;  %v2701_v17 = vpop.eup %1569  ;;  %v1041_v59 = vld [vmem:[#allocation4 + $0x20] sm:$0xff]  ;;  %v2734_v57 = vld [vmem:[#allocation5 + $0x50] sm:$0xff] }
 0x247   :  { %1577 = vpow2.f32 %v509_v7  ;;  %1373 = vst.msk [vmem:[%s3205_s3] sm:$0xff] %vm18_vm8, %v1357_v15  ;;  %v1073_v19 = vmul.f32 %v2474_v53, %v1025_v21  ;;  %v562_v12 = vmul.f32 %v1564_v55, %v546_v41  ;;  %v2716_v53 = vadd.f32 1.1754944e-38, %v2682_v45  ;;  %v3285_v15 = vld [vmem:[#allocation7_spill] sm:$0xff] }
 0x248   :  { %1579 = vpow2.f32 %v519_v43  ;;  %v563_v55 = vmul.f32 %v1566_v23, %v547_v31  ;;  %v1254_v41 = vsub.f32 1.0, %v2679_v26  ;;  %v3286_v21 = vsub.f32 %v3284_v3, %v3285_v15 }
 0x249   :  { %v716_v7 = vpop.xlane.xlu0 %715  ;;  %v1089_v23 = vsub.f32 %v1041_v59, %v1073_v19  ;;  %vm1258_vm5 = vweird.f32 %v2630_v28  ;;  %v3289_v45 = vsub.f32 %v3287_v1, %v3288_v56  ;;  %v1190_v26 = vsel %vm2659_vm10, %v1189_v51, %v1185_v50  ;;  %v2747_v59 = vld [vmem:[#allocation5 + $0x78] sm:$0xff]  ;;  %v958_v51 = vld [vmem:[#allocation2 + $0x8] sm:$0xff] }
 0x24a   :  { %v1572_v49 = vpop.eup %1571  ;;  %v517_v54 = vmul.f32 1.442695, %v3286_v21  ;;  %v738_v31 = vadd.f32 %v716_v7, %v562_v12  ;;  %v718_v62 = vpop.xlane.xlu1 %717  ;;  %v2745_v12 = vmul.f32 %v2684_v24, %v2587_v18  ;;  %v965_v7 = vld [vmem:[#allocation2 + $0x40] sm:$0xff]  ;;  %v1255_v2 = vmul.f32 %v2630_v28, %v1254_v41 }
 0x24b   :  { %v1574_v52 = vpop.eup %1573  ;;  %v533_v58 = vmul.f32 1.442695, %v3289_v45  ;;  %v1006_v38 = vmul.f32 0.6931472, %v1572_v49  ;;  %v978_v3 = vld [vmem:[#allocation3 + $0x28] sm:$0xff]  ;;  %v739_v15 = vadd.f32 %v718_v62, %v563_v55  ;;  %v1191_v21 = vmul.f32 %v1190_v26, %v1089_v23  ;;  %v539_v55 = vld [vmem:[#allocation3 + $0x10] sm:$0xff] }
 0x24c   :  { %v2741_v19 = vpop.eup %1575  ;;  %v992_v16 = vmul.f32 0.6931472, %v1574_v52  ;;  %1581 = vlog2.f32 %v978_v3  ;;  %755 = vst.msk [vmem:[#allocation3 + $0x48] sm:$0xff] %vm18_vm8, %v738_v31  ;;  %v1245_v62 = vsel %vm2724_vm14, %v2544_v63, %v2689_v44  ;;  %v1140_v52 = vsel %vm2709_vm13, %v2536_v33, %v2649_v42  ;;  %v544_v26 = vld [vmem:[#allocation3 + $0x38] sm:$0xff]  ;;  %vm2796_vm13 = vmor %vm1197_vm9, %vm1198_vm7 }
 0x24d   :  { %v1578_v56 = vpop.eup %1577  ;;  %1583 = vrcp.f32 %v2716_v53  ;;  %v1029_v50 = vadd.f32 %v1006_v38, %v965_v7  ;;  %756 = vst.msk [vmem:[#allocation3 + $0x50] sm:$0xff] %vm18_vm8, %v739_v15  ;;  %v2767_v23 = vadd.f32 1.1754944e-38, %v2734_v57  ;;  %v1361_v31 = vsub.f32 0.0, %v1191_v21  ;;  %vm2833_vm7 = vmor %vm1152_vm12, %vm1153_vm11 }
 0x24e   :  { %v1580_v49 = vpop.eup %1579  ;;  %1585 = vpow2.f32 %v517_v54  ;;  %v1022_v1 = vadd.f32 %v992_v16, %v958_v51  ;;  %v2771_v63 = vadd.f32 1.1754944e-38, %v2747_v59  ;;  %vm1168_vm10 = vweird.f32 %v2500_v36  ;;  %v1045_v16 = vld [vmem:[#allocation4 + $0x40] sm:$0xff]  ;;  %vm2849_vm12 = vmor %vm1212_vm6, %vm1213_vm2 }
 0x24f   :  { %1587 = vpow2.f32 %v533_v58  ;;  %v1077_v38 = vmul.f32 %v2468_v4, %v1029_v50  ;;  %v1284_v33 = vsub.f32 1.0, %v2745_v12  ;;  %v2779_v42 = vmul.f32 %v2741_v19, %v2634_v5  ;;  %1377 = vst.msk [vmem:[%s3205_s3 + $0x20] sm:$0xff] %vm18_vm8, %v1361_v31  ;;  %v1038_v4 = vld [vmem:[#allocation4 + $0x8] sm:$0xff]  ;;  %v3307_v31 = vld [vmem:[#allocation12_spill] sm:$0xff]  ;;  %vm2864_vm6 = vmor %vm1257_vm0, %vm1258_vm5 }
 0x250   :  { %v1070_v58 = vmul.f32 %v2464_v60, %v1022_v1  ;;  %v555_v54 = vmul.f32 %v1578_v56, %v539_v55  ;;  %v1250_v44 = vsel %vm2673_vm4, %v2583_v48, %v1245_v62  ;;  %v1145_v41 = vsel %vm2667_vm1, %v2566_v30, %v1140_v52  ;;  %v3296_v48 = vld [vmem:[#allocation11_spill] sm:$0xff]  ;;  %v3308_v1 = vld [vmem:[#allocation14_spill] sm:$0xff]  ;;  %vm2915_vm2 = vmor %vm1167_vm15, %vm1168_vm10 }
 0x251   :  { %v1093_v43 = vsub.f32 %v1045_v16, %v1077_v38  ;;  %v702_v3 = vpop.xlane.xlu0 %701  ;;  %v560_v15 = vmul.f32 %v1580_v49, %v544_v26  ;;  %1589 = vrcp.f32 %v2767_v23  ;;  %v3297_v7 = vsub.f32 %v3295_v11, %v3296_v48  ;;  %v2824_v49 = vld [vmem:[#allocation5 + $0x68] sm:$0xff]  ;;  %v3323_v11 = vld [vmem:[#allocation17_spill] sm:$0xff] }
 0x252   :  { %v1582_v12 = vpop.eup %1581  ;;  %v1086_v56 = vsub.f32 %v1038_v4, %v1070_v58  ;;  %v731_v0 = vadd.f32 %v702_v3, %v555_v54  ;;  %v712_v30 = vpop.xlane.xlu1 %711  ;;  %v3298_v51 = vand.u32 2147483647, %v2445_v20  ;;  %vm2814_vm4 = vcmp.eq.f32.partialorder %v3301_v29, 8.507059e+37  ;;  %v1046_v50 = vld [vmem:[#allocation4 + $0x48] sm:$0xff] }
 0x253   :  { %v511_v21 = vmul.f32 1.442695, %v3297_v7  ;;  %v2804_v6 = vpop.eup %1583  ;;  %v3304_v52 = vand.u32 2147483647, %v2577_v9  ;;  %v3309_v26 = vsub.f32 %v3307_v31, %v3308_v1  ;;  %v1251_v16 = vmul.f32 %v1250_v44, %v1093_v43  ;;  %v982_v54 = vld [vmem:[#allocation3 + $0x48] sm:$0xff] }
 0x254   :  { %vm2808_vm1 = vcmp.eq.f32.partialorder %v3298_v51, 8.507059e+37  ;;  %v1000_v58 = vmul.f32 0.6931472, %v1582_v12  ;;  %v736_v4 = vadd.f32 %v712_v30, %v560_v15  ;;  %v1586_v3 = vpop.eup %1585  ;;  %v2838_v48 = vadd.f32 %v2630_v28, %v1255_v2  ;;  %v962_v44 = vld [vmem:[#allocation2 + $0x28] sm:$0xff]  ;;  %748 = vst.msk [vmem:[#allocation3 + $0x10] sm:$0xff] %vm18_vm8, %v731_v0  ;;  %v551_v0 = vld [vmem:[#allocation3 + $0x70] sm:$0xff] }
 0x255   :  { %vm2820_vm9 = vcmp.eq.f32.partialorder %v3304_v52, 8.507059e+37  ;;  %v535_v38 = vmul.f32 1.442695, %v3309_v26  ;;  %v3312_v7 = vand.u32 2147483648, %v2634_v5  ;;  %v1146_v43 = vmul.f32 %v1145_v41, %v1086_v56  ;;  %v1588_v15 = vpop.eup %1587  ;;  %v543_v56 = vld [vmem:[#allocation3 + $0x30] sm:$0xff]  ;;  %v1042_v52 = vld [vmem:[#allocation4 + $0x28] sm:$0xff] }
 0x256   :  { %1591 = vlog2.f32 %v982_v54  ;;  %vm1227_vm11 = vweird.f32 %v2634_v5  ;;  %v1365_v2 = vsub.f32 0.0, %v1251_v16  ;;  %v1200_v41 = vsel %vm2796_vm13, %v2510_v10, %v2603_v47  ;;  %753 = vst.msk [vmem:[#allocation3 + $0x38] sm:$0xff] %vm18_vm8, %v736_v4  ;;  %v773_v26 = vld [vmem:[#allocation4 + $0x58] sm:$0xff] }
 0x257   :  { %v2842_v51 = vor.u32 1.1754944e-38, %v3312_v7  ;;  %1593 = vrcp.f32 %v2771_v63  ;;  %v1026_v12 = vadd.f32 %v1000_v58, %v962_v44  ;;  %v1224_v30 = vsub.f32 1.0, %v2779_v42  ;;  %v2884_v42 = vpop.eup %1589 }
 0x258   :  { %v2870_v29 = vadd.f32 1.1754944e-38, %v2824_v49  ;;  %1595 = vpow2.f32 %v511_v21  ;;  %v1358_v10 = vsub.f32 0.0, %v1146_v43  ;;  %v2873_v47 = vmul.f32 %v2684_v24, %v1284_v33  ;;  %1381 = vst.msk [vmem:[%s3205_s3 + $0x40] sm:$0xff] %vm18_vm8, %v1365_v2 }
 0x259   :  { %v2877_v60 = vmul.f32 %v2701_v17, %v2607_v40  ;;  %1597 = vpow2.f32 %v535_v38  ;;  %v1074_v9 = vmul.f32 %v2447_v37, %v1026_v12  ;;  %v1328_v21 = vmul.f32 %v2804_v6, %v2716_v53  ;;  %v726_v58 = vpop.xlane.xlu2 %725 }
 0x25a   :  { %1374 = vst.msk [vmem:[%s3205_s3 + $0x8] sm:$0xff] %vm18_vm8, %v1358_v10  ;;  %v1205_v33 = vsel %vm2752_vm3, %v2539_v32, %v1200_v41  ;;  %v559_v31 = vmul.f32 %v1586_v3, %v543_v56  ;;  %v567_v1 = vmul.f32 %v1588_v15, %v551_v0  ;;  %v1260_v37 = vsel %vm2864_vm6, %v2630_v28, %v2838_v48  ;;  %v710_v32 = vpop.xlane.xlu0 %709  ;;  %v817_v28 = vpop.xlane.xlu1 %816 }
 0x25b   :  { %v1090_v38 = vsub.f32 %v1042_v52, %v1074_v9  ;;  %v1155_v16 = vsel %vm2833_vm7, %v2488_v34, %v2580_v61  ;;  %v1215_v45 = vsel %vm2849_vm12, %v2519_v22, %v2611_v8  ;;  %v1225_v4 = vmul.f32 %v2741_v19, %v1224_v30  ;;  %v3322_v8 = vld [vmem:[#allocation16_spill] sm:$0xff]  ;;  %v3331_v61 = vld [vmem:[#allocation18_spill] sm:$0xff] }
 0x25c   :  { %v1592_v54 = vpop.eup %1591  ;;  %1599 = vrcp.f32 %v2870_v29  ;;  %v735_v3 = vadd.f32 %v710_v32, %v559_v31  ;;  %v743_v7 = vadd.f32 %v726_v58, %v567_v1  ;;  %v3319_v22 = vand.u32 2147483647, %v2634_v5  ;;  %v975_v2 = vld [vmem:[#allocation3 + $0x10] sm:$0xff]  ;;  %v552_v31 = vld [vmem:[#allocation3 + $0x78] sm:$0xff] }
 0x25d   :  { %v2909_v48 = vpop.eup %1593  ;;  %v3324_v44 = vsub.f32 %v3322_v8, %v3323_v11  ;;  %v1206_v15 = vmul.f32 %v1205_v33, %v1090_v38  ;;  %v1008_v20 = vmul.f32 0.6931472, %v1592_v54  ;;  %v837_v41 = vadd.f32 %v817_v28, %v773_v26  ;;  %v980_v30 = vld [vmem:[#allocation3 + $0x38] sm:$0xff]  ;;  %v983_v26 = vld [vmem:[#allocation3 + $0x50] sm:$0xff] }
 0x25e   :  { %vm2921_vm14 = vcmp.eq.f32.partialorder %v3319_v22, 8.507059e+37  ;;  %v1596_v12 = vpop.eup %1595  ;;  %v1299_v56 = vsub.f32 1.0, %v2877_v60  ;;  %vm1228_vm0 = vweird.f32 %v2741_v19  ;;  %v1329_v0 = vsub.f32 1.0, %v1328_v21  ;;  %752 = vst.msk [vmem:[#allocation3 + $0x30] sm:$0xff] %vm18_vm8, %v735_v3  ;;  %v540_v1 = vld [vmem:[#allocation3 + $0x18] sm:$0xff] }
 0x25f   :  { %v527_v43 = vmul.f32 1.442695, %v3324_v44  ;;  %1601 = vlog2.f32 %v975_v2  ;;  %v1598_v10 = vpop.eup %1597  ;;  %v1268_v9 = vmul.f32 %v2884_v42, %v2767_v23  ;;  %v1362_v52 = vsub.f32 0.0, %v1206_v15  ;;  %760 = vst.msk [vmem:[#allocation3 + $0x70] sm:$0xff] %vm18_vm8, %v743_v7  ;;  %vm2965_vm3 = vmor %vm1227_vm11, %vm1228_vm0 }
 0x260   :  { %v1030_v33 = vadd.f32 %v1008_v20, %v966_v14  ;;  %1603 = vlog2.f32 %v980_v30  ;;  %v1265_v21 = vsel %vm2820_vm9, %v2626_v39, %v1260_v37  ;;  %v2940_v38 = vsel %vm2808_vm1, %v2527_v35, %v1155_v16  ;;  %853 = vst.msk [vmem:[#allocation4 + $0x58] sm:$0xff] %vm18_vm8, %v837_v41  ;;  %v776_v16 = vld [vmem:[#allocation4 + $0x70] sm:$0xff] }
 0x261   :  { %v2945_v32 = vsel %vm2814_vm4, %v2552_v27, %v1215_v45  ;;  %v1170_v58 = vsel %vm2915_vm2, %v2500_v36, %v2595_v13  ;;  %v1226_v39 = vadd.f32 %v2741_v19, %v1225_v4  ;;  %1605 = vpow2.f32 %v527_v43  ;;  %1378 = vst.msk [vmem:[%s3205_s3 + $0x28] sm:$0xff] %vm18_vm8, %v1362_v52  ;;  %v704_v7 = vpop.xlane.xlu2 %703 }
 0x262   :  { %v1078_v35 = vmul.f32 %v2559_v46, %v1030_v33  ;;  %vm1332_vm5 = vweird.f32 %v2716_v53  ;;  %v2959_v27 = vpop.eup %1599  ;;  %v568_v55 = vmul.f32 %v1598_v10, %v552_v31  ;;  %v556_v37 = vmul.f32 %v1596_v12, %v540_v1  ;;  %v728_v5 = vpop.xlane.xlu0 %727  ;;  %v964_v33 = vld [vmem:[#allocation2 + $0x38] sm:$0xff]  ;;  %v986_v31 = vld [vmem:[#allocation3 + $0x68] sm:$0xff] }
 0x263   :  { %v1330_v45 = vmul.f32 %v2804_v6, %v1329_v0  ;;  %v1336_v46 = vand.u32 2147483647, %v2716_v53  ;;  %v2973_v54 = vmul.f32 %v2909_v48, %v2771_v63  ;;  %v1269_v4 = vsub.f32 1.0, %v1268_v9  ;;  %v823_v44 = vpop.xlane.xlu1 %822  ;;  %v959_v0 = vld [vmem:[#allocation2 + $0x10] sm:$0xff] }
 0x264   :  { %v1094_v3 = vsub.f32 %v1046_v50, %v1078_v35  ;;  %1607 = vlog2.f32 %v983_v26  ;;  %v744_v22 = vadd.f32 %v728_v5, %v568_v55  ;;  %v732_v8 = vadd.f32 %v704_v7, %v556_v37  ;;  %v548_v26 = vld [vmem:[#allocation3 + $0x58] sm:$0xff]  ;;  %v985_v35 = vld [vmem:[#allocation3 + $0x60] sm:$0xff] }
 0x265   :  { %v1602_v28 = vpop.eup %1601  ;;  %vm1333_vm15 = vweird.f32 %v2804_v6  ;;  %v1338_v11 = vand.u32 2147483648, %v2716_v53  ;;  %v1230_v2 = vsel %vm2965_vm3, %v2741_v19, %v1226_v39  ;;  %v979_v41 = vld [vmem:[#allocation3 + $0x30] sm:$0xff]  ;;  %v840_v12 = vadd.f32 %v823_v44, %v776_v16 }
 0x266   :  { %v1604_v43 = vpop.eup %1603  ;;  %v1266_v15 = vmul.f32 %v1265_v21, %v1094_v3  ;;  %v994_v20 = vmul.f32 0.6931472, %v1602_v28  ;;  %1609 = vlog2.f32 %v979_v41  ;;  %v987_v30 = vld [vmem:[#allocation3 + $0x70] sm:$0xff]  ;;  %761 = vst.msk [vmem:[#allocation3 + $0x78] sm:$0xff] %vm18_vm8, %v744_v22  ;;  %v2982_v10 = vadd.f32 %v2804_v6, %v1330_v45  ;;  %vm3001_vm13 = vmor %vm1332_vm5, %vm1333_vm15  ;;  %v1044_v28 = vld [vmem:[#allocation4 + $0x38] sm:$0xff] }
 0x267   :  { %v1004_v14 = vmul.f32 0.6931472, %v1604_v43  ;;  %vm2984_vm10 = vcmp.eq.f32.partialorder %v1336_v46, 8.507059e+37  ;;  %v1606_v52 = vpop.eup %1605  ;;  %1611 = vlog2.f32 %v987_v30  ;;  %749 = vst.msk [vmem:[#allocation3 + $0x18] sm:$0xff] %vm18_vm8, %v732_v8  ;;  %v1270_v21 = vmul.f32 %v2884_v42, %v1269_v4  ;;  %v772_v45 = vld [vmem:[#allocation4 + $0x50] sm:$0xff]  ;;  %v3332_v4 = vld [vmem:[#allocation23_spill] sm:$0xff] }
 0x268   :  { %v1366_v1 = vsub.f32 0.0, %v1266_v15  ;;  %v1023_v19 = vadd.f32 %v994_v20, %v959_v0  ;;  %v2992_v39 = vmul.f32 %v2959_v27, %v2870_v29  ;;  %v1235_v62 = vsel %vm2921_vm14, %v2842_v51, %v1230_v2  ;;  %856 = vst.msk [vmem:[#allocation4 + $0x70] sm:$0xff] %vm18_vm8, %v840_v12  ;;  %v1039_v46 = vld [vmem:[#allocation4 + $0x10] sm:$0xff] }
 0x269   :  { %v1028_v50 = vadd.f32 %v1004_v14, %v964_v33  ;;  %v1339_v37 = vor.u32 1.1754944e-38, %v1338_v11  ;;  %vm1272_vm1 = vweird.f32 %v2767_v23  ;;  %vm1273_vm4 = vweird.f32 %v2884_v42  ;;  %v720_v43 = vpop.xlane.xlu2 %719  ;;  %v963_v33 = vld [vmem:[#allocation2 + $0x30] sm:$0xff] }
 0x26a   :  { %v1608_v16 = vpop.eup %1607  ;;  %1382 = vst.msk [vmem:[%s3205_s3 + $0x48] sm:$0xff] %vm18_vm8, %v1366_v1  ;;  %v1071_v51 = vmul.f32 %v3331_v61, %v1023_v19  ;;  %v1278_v53 = vand.u32 2147483648, %v2767_v23  ;;  %1613 = vlog2.f32 %v986_v31  ;;  %v1276_v5 = vand.u32 2147483647, %v2767_v23  ;;  %v815_v44 = vpop.xlane.xlu0 %814  ;;  %vm3025_vm9 = vmor %vm1272_vm1, %vm1273_vm4 }
 0x26b   :  { %v1076_v3 = vmul.f32 %v3332_v4, %v1028_v50  ;;  %v564_v7 = vmul.f32 %v1606_v52, %v548_v26  ;;  %1615 = vlog2.f32 %v985_v35  ;;  %v1335_v8 = vsel %vm3001_vm13, %v2804_v6, %v2982_v10  ;;  %v967_v26 = vld [vmem:[#allocation2 + $0x50] sm:$0xff]  ;;  %v775_v4 = vld [vmem:[#allocation4 + $0x68] sm:$0xff] }
 0x26c   :  { %v1087_v22 = vsub.f32 %v1039_v46, %v1071_v51  ;;  %v1271_v11 = vadd.f32 %v2884_v42, %v1270_v21  ;;  %v1610_v15 = vpop.eup %1609  ;;  %v1010_v20 = vmul.f32 0.6931472, %v1608_v16  ;;  %v836_v12 = vadd.f32 %v815_v44, %v772_v45  ;;  %v3351_v16 = vld [vmem:[#allocation22_spill] sm:$0xff] }
 0x26d   :  { %v1092_v2 = vsub.f32 %v1044_v28, %v1076_v3  ;;  %v740_v0 = vadd.f32 %v720_v43, %v564_v7  ;;  %vm1302_vm7 = vweird.f32 %v2607_v40  ;;  %v1612_v6 = vpop.eup %1611  ;;  %v1314_v14 = vsub.f32 1.0, %v2992_v39  ;;  %v971_v39 = vld [vmem:[#allocation2 + $0x70] sm:$0xff]  ;;  %v988_v61 = vld [vmem:[#allocation3 + $0x78] sm:$0xff]  ;;  %v774_v3 = vld [vmem:[#allocation4 + $0x60] sm:$0xff] }
 0x26e   :  { %v1161_v30 = vmul.f32 %v2940_v38, %v1087_v22  ;;  %v1002_v10 = vmul.f32 0.6931472, %v1610_v15  ;;  %v1279_v52 = vor.u32 1.1754944e-38, %v1278_v53  ;;  %v1018_v1 = vmul.f32 0.6931472, %v1612_v6  ;;  %v976_v19 = vld [vmem:[#allocation3 + $0x18] sm:$0xff] }
 0x26f   :  { %v1236_v31 = vmul.f32 %v1235_v62, %v1092_v2  ;;  %vm3032_vm12 = vcmp.eq.f32.partialorder %v1276_v5, 8.507059e+37  ;;  %852 = vst.msk [vmem:[#allocation4 + $0x50] sm:$0xff] %vm18_vm8, %v836_v12  ;;  %v1300_v21 = vmul.f32 %v2701_v17, %v1299_v56  ;;  %1617 = vlog2.f32 %v976_v19  ;;  %v1043_v7 = vld [vmem:[#allocation4 + $0x30] sm:$0xff]  ;;  %v3341_v28 = vld [vmem:[#allocation13_spill] sm:$0xff] }
 0x270   :  { %v1359_v35 = vsub.f32 0.0, %v1161_v30  ;;  %v1027_v38 = vadd.f32 %v1002_v10, %v963_v33  ;;  %v1275_v62 = vsel %vm3025_vm9, %v2884_v42, %v1271_v11  ;;  %757 = vst.msk [vmem:[#allocation3 + $0x58] sm:$0xff] %vm18_vm8, %v740_v0  ;;  %v1614_v50 = vpop.eup %1613  ;;  %v3337_v55 = vand.u32 2147483647, %v2449_v25  ;;  %v3340_v42 = vld [vmem:[#allocation19_spill] sm:$0xff]  ;;  %v1051_v43 = vld [vmem:[#allocation4 + $0x70] sm:$0xff] }
 0x271   :  { %v1344_v60 = vsub.f32 1.0, %v2973_v54  ;;  %v1364_v56 = vsub.f32 0.0, %v1236_v31  ;;  %v1035_v51 = vadd.f32 %v1018_v1, %v971_v39  ;;  %v1031_v45 = vadd.f32 %v1010_v20, %v967_v26  ;;  %v1616_v53 = vpop.eup %1615  ;;  %v819_v2 = vpop.xlane.xlu2 %818 }
 0x272   :  { %vm3046_vm11 = vcmp.eq.f32.partialorder %v3337_v55, 8.507059e+37  ;;  %1375 = vst.msk [vmem:[%s3205_s3 + $0x10] sm:$0xff] %vm18_vm8, %v1359_v35  ;;  %v1075_v46 = vmul.f32 %v3340_v42, %v1027_v38  ;;  %v1340_v25 = vsel %vm2984_vm10, %v1339_v37, %v1335_v8  ;;  %vm1303_vm6 = vweird.f32 %v2701_v17  ;;  %v821_v20 = vpop.xlane.xlu0 %820  ;;  %v969_v38 = vld [vmem:[#allocation2 + $0x60] sm:$0xff]  ;;  %v777_v42 = vld [vmem:[#allocation4 + $0x78] sm:$0xff] }
 0x273   :  { %v1306_v5 = vand.u32 2147483647, %v2607_v40  ;;  %1380 = vst.msk [vmem:[%s3205_s3 + $0x38] sm:$0xff] %vm18_vm8, %v1364_v56  ;;  %v1083_v22 = vmul.f32 %v3341_v28, %v1035_v51  ;;  %v1280_v11 = vsel %vm3032_vm12, %v1279_v52, %v1275_v62  ;;  %v3068_v9 = vadd.f32 %v2701_v17, %v1300_v21  ;;  %v960_v21 = vld [vmem:[#allocation2 + $0x18] sm:$0xff]  ;;  %vm3086_vm15 = vmor %vm1302_vm7, %vm1303_vm6 }
 0x274   :  { %v1308_v37 = vand.u32 2147483648, %v2607_v40  ;;  %v1016_v8 = vmul.f32 0.6931472, %v1614_v50  ;;  %v1091_v44 = vsub.f32 %v1043_v7, %v1075_v46  ;;  %1619 = vlog2.f32 %v988_v61  ;;  %v1623_v46 = vld [vmem:[#allocation5 + $0x18] sm:$0xff]  ;;  %v3348_v7 = vld [vmem:[#allocation20_spill] sm:$0xff] }
 0x275   :  { %v1315_v15 = vmul.f32 %v2959_v27, %v1314_v14  ;;  %vm1287_vm14 = vweird.f32 %v2587_v18  ;;  %vm1288_vm0 = vweird.f32 %v2684_v24  ;;  %v1099_v41 = vsub.f32 %v1051_v43, %v1083_v22  ;;  %v1618_v30 = vpop.eup %1617 }
 0x276   :  { %v1079_v12 = vmul.f32 %v2734_v57, %v1031_v45  ;;  %v839_v0 = vadd.f32 %v821_v20, %v775_v4  ;;  %v838_v6 = vadd.f32 %v819_v2, %v774_v3  ;;  %v1014_v10 = vmul.f32 0.6931472, %v1616_v53  ;;  %v1047_v33 = vld [vmem:[#allocation4 + $0x50] sm:$0xff]  ;;  %v970_v57 = vld [vmem:[#allocation2 + $0x68] sm:$0xff]  ;;  %vm3153_vm9 = vmor %vm1287_vm14, %vm1288_vm0 }
 0x277   :  { %v1221_v52 = vmul.f32 %v2945_v32, %v1091_v44  ;;  %vm1317_vm5 = vweird.f32 %v2870_v29  ;;  %vm1318_vm3 = vweird.f32 %v2959_v27  ;;  %v996_v14 = vmul.f32 0.6931472, %v1618_v30  ;;  %v984_v19 = vld [vmem:[#allocation3 + $0x58] sm:$0xff] }
 0x278   :  { %v1341_v31 = vmul.f32 %v1340_v25, %v1099_v41  ;;  %v1095_v1 = vsub.f32 %v1047_v33, %v1079_v12  ;;  %v1323_v23 = vand.u32 2147483648, %v2870_v29  ;;  %855 = vst.msk [vmem:[#allocation4 + $0x68] sm:$0xff] %vm18_vm8, %v839_v0  ;;  %1621 = vlog2.f32 %v984_v19  ;;  %vm3095_vm10 = vmor %vm1317_vm5, %vm1318_vm3  ;;  %v972_v2 = vld [vmem:[#allocation2 + $0x78] sm:$0xff] }
 0x279   :  { %v1363_v26 = vsub.f32 0.0, %v1221_v52  ;;  %v1316_v39 = vadd.f32 %v2959_v27, %v1315_v15  ;;  %v1321_v32 = vand.u32 2147483647, %v2870_v29  ;;  %854 = vst.msk [vmem:[#allocation4 + $0x60] sm:$0xff] %vm18_vm8, %v838_v6  ;;  %v1024_v62 = vadd.f32 %v996_v14, %v960_v21  ;;  %v968_v41 = vld [vmem:[#allocation2 + $0x58] sm:$0xff] }
 0x27a   :  { %v1371_v50 = vsub.f32 0.0, %v1341_v31  ;;  %v1281_v55 = vmul.f32 %v1280_v11, %v1095_v1  ;;  %v1034_v61 = vadd.f32 %v1016_v8, %v970_v57  ;;  %v1620_v40 = vpop.eup %1619  ;;  %v3101_v51 = vadd.f32 %v2684_v24, %v2873_v47 }
 0x27b   :  { %1379 = vst.msk [vmem:[%s3205_s3 + $0x30] sm:$0xff] %vm18_vm8, %v1363_v26  ;;  %v1033_v45 = vadd.f32 %v1014_v10, %v969_v38  ;;  %vm3107_vm13 = vcmp.eq.f32.partialorder %v1306_v5, 8.507059e+37  ;;  %v1309_v29 = vor.u32 1.1754944e-38, %v1308_v37  ;;  %v1072_v25 = vmul.f32 %v1623_v46, %v1024_v62  ;;  %v1040_v5 = vld [vmem:[#allocation4 + $0x18] sm:$0xff] }
 0x27c   :  { %1387 = vst.msk [vmem:[%s3205_s3 + $0x70] sm:$0xff] %vm18_vm8, %v1371_v50  ;;  %v1367_v47 = vsub.f32 0.0, %v1281_v55  ;;  %v1305_v4 = vsel %vm3086_vm15, %v2701_v17, %v3068_v9  ;;  %v1345_v3 = vmul.f32 %v2909_v48, %v1344_v60  ;;  %v1175_v28 = vsel %vm3046_vm11, %v3348_v7, %v1170_v58  ;;  %v825_v60 = vpop.xlane.xlu2 %824  ;;  %v3358_v26 = vld [vmem:[#allocation21_spill] sm:$0xff] }
 0x27d   :  { %v1320_v22 = vsel %vm3095_vm10, %v2959_v27, %v1316_v39  ;;  %vm3133_vm1 = vcmp.eq.f32.partialorder %v1321_v32, 8.507059e+37  ;;  %v1324_v54 = vor.u32 1.1754944e-38, %v1323_v23  ;;  %v1020_v11 = vmul.f32 0.6931472, %v1620_v40  ;;  %v1048_v32 = vld [vmem:[#allocation4 + $0x58] sm:$0xff] }
 0x27e   :  { %v1088_v9 = vsub.f32 %v1040_v5, %v1072_v25  ;;  %1383 = vst.msk [vmem:[%s3205_s3 + $0x50] sm:$0xff] %vm18_vm8, %v1367_v47  ;;  %v1082_v36 = vmul.f32 %v2824_v49, %v1034_v61  ;;  %v841_v13 = vadd.f32 %v825_v60, %v777_v42  ;;  %v1622_v34 = vpop.eup %1621  ;;  %v1081_v27 = vmul.f32 %v3351_v16, %v1033_v45 }
 0x27f   :  { %v1050_v58 = vld [vmem:[#allocation4 + $0x68] sm:$0xff]  ;;  %v1310_v37 = vsel %vm3107_vm13, %v1309_v29, %v1305_v4  ;;  %vm1347_vm2 = vweird.f32 %v2771_v63  ;;  %vm1348_vm4 = vweird.f32 %v2909_v48  ;;  %v1012_v44 = vmul.f32 0.6931472, %v1622_v34 }
 0x280   :  { %v1176_v8 = vmul.f32 %v1175_v28, %v1088_v9  ;;  %v1098_v43 = vsub.f32 %v1050_v58, %v1082_v36  ;;  %v1049_v15 = vld [vmem:[#allocation4 + $0x60] sm:$0xff]  ;;  %v1346_v20 = vadd.f32 %v2909_v48, %v1345_v3  ;;  %857 = vst.msk [vmem:[#allocation4 + $0x78] sm:$0xff] %vm18_vm8, %v841_v13  ;;  %v1325_v12 = vsel %vm3133_vm1, %v1324_v54, %v1320_v22  ;;  %vm3167_vm7 = vmor %vm1347_vm2, %vm1348_vm4 }
 0x281   :  { %v1097_v0 = vsub.f32 %v1049_v15, %v1081_v27  ;;  %v1351_v6 = vand.u32 2147483647, %v2771_v63  ;;  %v1353_v30 = vand.u32 2147483648, %v2771_v63  ;;  %v1032_v52 = vadd.f32 %v1012_v44, %v968_v41 }
 0x282   :  { %v1360_v10 = vsub.f32 0.0, %v1176_v8  ;;  %v1326_v33 = vmul.f32 %v1325_v12, %v1098_v43  ;;  %v1036_v14 = vadd.f32 %v1020_v11, %v972_v2  ;;  %v3354_v31 = vand.u32 2147483648, %v2587_v18 }
 0x283   :  { %v1311_v19 = vmul.f32 %v1310_v37, %v1097_v0  ;;  %v3357_v57 = vand.u32 2147483647, %v2587_v18  ;;  %v1290_v21 = vsel %vm3153_vm9, %v2684_v24, %v3101_v51  ;;  %v1080_v39 = vmul.f32 %v3358_v26, %v1032_v52 }
 0x284   :  { %v1294_v1 = vor.u32 1.1754944e-38, %v3354_v31  ;;  %1376 = vst.msk [vmem:[%s3205_s3 + $0x18] sm:$0xff] %vm18_vm8, %v1360_v10  ;;  %v1370_v63 = vsub.f32 0.0, %v1326_v33  ;;  %v1354_v38 = vor.u32 1.1754944e-38, %v1353_v30  ;;  %v1084_v18 = vmul.f32 %v2747_v59, %v1036_v14 }
 0x285   :  { %vm1292_vm12 = vcmp.eq.f32.partialorder %v3357_v57, 8.507059e+37  ;;  %v1369_v35 = vsub.f32 0.0, %v1311_v19  ;;  %v1096_v62 = vsub.f32 %v1048_v32, %v1080_v39  ;;  %v1350_v50 = vsel %vm3167_vm7, %v2909_v48, %v1346_v20 }
 0x286   :  { %1386 = vst.msk [vmem:[%s3205_s3 + $0x68] sm:$0xff] %vm18_vm8, %v1370_v63  ;;  %vm1352_vm11 = vcmp.eq.f32.partialorder %v1351_v6, 8.507059e+37  ;;  %v1295_v24 = vsel %vm1292_vm12, %v1294_v1, %v1290_v21 }
 0x287   :  { %1385 = vst.msk [vmem:[%s3205_s3 + $0x60] sm:$0xff] %vm18_vm8, %v1369_v35  ;;  %v1052_v55 = vld [vmem:[#allocation4 + $0x78] sm:$0xff]  ;;  %v1296_v56 = vmul.f32 %v1295_v24, %v1096_v62  ;;  %v1355_v40 = vsel %vm1352_vm11, %v1354_v38, %v1350_v50 }
 0x288   :  { %v1100_v61 = vsub.f32 %v1052_v55, %v1084_v18 }
 0x289   :  { %v1368_v51 = vsub.f32 0.0, %v1296_v56 }
 0x28a   :  { %v1356_v45 = vmul.f32 %v1355_v40, %v1100_v61 }
 0x28b   :  { %1384 = vst.msk [vmem:[%s3205_s3 + $0x58] sm:$0xff] %vm18_vm8, %v1368_v51 }
 0x28c   :  { %v1372_v59 = vsub.f32 0.0, %v1356_v45 }
 0x28e   :  { %1388 = vst.msk [vmem:[%s3205_s3 + $0x78] sm:$0xff] %vm18_vm8, %v1372_v59 }

</bundles_post_ra>
